<compile_context>
chip_gen: v6e
topology: v6e:2x2x1
jax: 0.10.0
libtpu: 0.0.40
codegen_flags: <defaults>
</compile_context>

<pallas_src>
import functools
import math

import jax
import jax.numpy as jnp
from jax.experimental import pallas as pl
from jax.experimental.pallas import tpu as pltpu


# ------------------------------ Pallas kernel -------------------------------

def _embedding_gather_kernel(ids_ref, table_hbm, o_ref, buf, sems, *,
                             tokens_per_block, scale):
    """Double-buffered gather of `tokens_per_block` embedding rows from the
    HBM-resident table, fused with the sqrt(d_model) scale.

    buf : VMEM (2, T, D) landing buffer (slot = tile_index % 2)
    sems: DMA semaphores (2, T), one per in-flight row copy
    """
    T = tokens_per_block
    pid = pl.program_id(0)
    nprog = pl.num_programs(0)

    def issue_tile(tile_idx, slot):
        base = tile_idx * T
        for t in range(T):                       # static unroll
            row = ids_ref[base + t]              # dynamic scalar read from SMEM
            pltpu.make_async_copy(
                table_hbm.at[pl.ds(row, 1)],     # (1, D) row in HBM
                buf.at[slot, pl.ds(t, 1)],       # (1, D) slot in landing buffer
                sems.at[slot, t],
            ).start()

    # Prime the pipeline: the very first grid step issues its own tile.
    @pl.when(pid == 0)
    def _():
        issue_tile(0, 0)

    # One-step-ahead prefetch of the next tile into the other slot.
    # All SMEM id reads for the next tile happen before any .wait() below
    # (waits break SMEM sst->sld forwarding).
    @pl.when(pid + 1 < nprog)
    def _():
        issue_tile(pid + 1, (pid + 1) % 2)

    # Wait on this tile's row DMAs (issued one grid step ago, or just above
    # in the priming branch for pid == 0).
    slot = pid % 2
    for t in range(T):
        pltpu.make_async_copy(
            table_hbm.at[pl.ds(0, 1)],           # shape/dtype only (byte count)
            buf.at[slot, pl.ds(t, 1)],
            sems.at[slot, t],
        ).wait()

    # Fused scale; single lane-dense (T, D) store.
    o_ref[...] = (buf[slot] * scale).astype(o_ref.dtype)


# ------------------------------ Python wrapper -------------------------------

def pallas_embeddings(ids, table, d_model, *, tokens_per_block=128,
                      max_tokens_per_call=32768):
    """Embeddings.forward: table[ids] * sqrt(d_model), as one fused Pallas kernel.

    ids:   int array of token indices, any shape (e.g. [B, S]).
    table: [vocab, d_model] float embedding table.
    returns: ids.shape + (d_model,), same dtype as `table`.
    """
    orig_shape = ids.shape
    V, D = table.shape
    scale = float(math.sqrt(d_model))
    itemsize = jnp.dtype(table.dtype).itemsize

    flat = ids.reshape(-1).astype(jnp.int32)
    # Keep every row DMA in bounds (nn.Embedding would raise instead).
    flat = jnp.clip(flat, 0, V - 1)
    n = int(flat.shape[0])

    # Lane-dense last dim: pad d_model up to a multiple of 128 (sliced off after).
    D_pad = pl.cdiv(D, 128) * 128
    table_p = table if D_pad == D else jnp.pad(table, ((0, 0), (0, D_pad - D)))

    # Token tile size: multiple of 8 (sublane), clamped to the work size.
    T = min(int(tokens_per_block), pl.cdiv(n, 8) * 8)
    T = max(8, (T // 8) * 8)

    # SMEM guard: chunk the call so the scalar-prefetched id array stays small.
    chunk_tokens = max(T, (int(max_tokens_per_call) // T) * T)

    # VMEM budget: (2,T,D) gather buffer + Pallas' 2x-buffered (T,D) output block.
    vmem_bytes = 4 * T * D_pad * itemsize + (4 << 20)
    vmem_bytes = int(min(max(vmem_bytes, 16 << 20), 60 << 20))

    kernel = functools.partial(
        _embedding_gather_kernel, tokens_per_block=T, scale=scale)

    def run_chunk(chunk_ids):
        m = int(chunk_ids.shape[0])
        m_pad = pl.cdiv(m, T) * T
        if m_pad != m:
            # Pad with id 0 (valid row); padded rows are dropped after the call.
            chunk_ids = jnp.concatenate(
                [chunk_ids, jnp.zeros((m_pad - m,), jnp.int32)])

        out = pl.pallas_call(
            kernel,
            out_shape=jax.ShapeDtypeStruct((m_pad, D_pad), table_p.dtype),
            grid_spec=pltpu.PrefetchScalarGridSpec(
                num_scalar_prefetch=1,                         # token ids -> SMEM
                grid=(m_pad // T,),
                in_specs=[pl.BlockSpec(memory_space=pl.ANY)],  # table stays in HBM
                out_specs=pl.BlockSpec((T, D_pad), lambda i, ids: (i, 0)),
                scratch_shapes=[
                    pltpu.VMEM((2, T, D_pad), table_p.dtype),  # double buffer
                    pltpu.SemaphoreType.DMA((2, T)),           # per-row DMA sems
                ],
            ),
            compiler_params=pltpu.CompilerParams(
                # Cross-step prefetch carries in-flight DMA state in scratch
                # between consecutive grid steps -> must run sequentially.
                dimension_semantics=("arbitrary",),
                vmem_limit_bytes=vmem_bytes,
            ),
            cost_estimate=pl.CostEstimate(
                flops=0, transcendentals=0,
                bytes_accessed=2 * m_pad * D_pad * itemsize),
        )(chunk_ids, table_p)
        return out[:m]

    if n <= chunk_tokens:
        out = run_chunk(flat)
    else:
        parts = [run_chunk(flat[s:s + chunk_tokens])
                 for s in range(0, n, chunk_tokens)]
        out = jnp.concatenate(parts, axis=0)

    if D_pad != D:
        out = out[:, :D]
    return out.reshape(*orig_shape, D)


# ---------------------------------- Main -------------------------------------

if __name__ == "__main__":
    d_model, vocab = 32, 64
    B, S = 2, 8

    root = jax.random.PRNGKey(0)
    k_tab, k_ids = jax.random.split(root, 2)

    # nn.Embedding weight ~ N(0, 1); token ids in [0, vocab).
    table = jax.random.normal(k_tab, (vocab, d_model), dtype=jnp.float32)
    ids = jax.random.randint(k_ids, (B, S), 0, vocab, dtype=jnp.int32)

    out = pallas_embeddings(ids, table, d_model)
    out = jax.block_until_ready(out)

    # Reference: lut(x) * sqrt(d_model)
    ref = jnp.take(table, ids, axis=0) * math.sqrt(d_model)

    assert out.shape == (B, S, d_model)
    assert bool(jnp.all(jnp.isfinite(out)))
    assert bool(jnp.allclose(out, ref, atol=1e-6, rtol=1e-6))
    print("KERNEL_OK")
</pallas_src>

<mosaic_0001>
module attributes {stable_mosaic.version = 11 : i64} {
  func.func @_embedding_gather_kernel(%arg0: i32, %arg1: memref<16xi32, #tpu.memory_space<smem>>, %arg2: memref<64x128xf32, #tpu.memory_space<any>>, %arg3: memref<16x128xf32, #tpu.memory_space<vmem>>, %arg4: memref<2x16x128xf32, #tpu.memory_space<vmem>>, %arg5: memref<2x16x!tpu.dma_semaphore, #tpu.memory_space<semaphore_mem>>) attributes {dimension_semantics = [#tpu.dimension_semantics<arbitrary>], iteration_bounds = array<i64: 1>, scalar_prefetch = 1 : i64, scratch_operands = 2 : i64, tpu.core_type = #tpu.core_type<tc>, window_params = [{}, {transform_indices = @transform_1, window_bounds = array<i64: 16, 128>}]} {
    %c0_i32 = arith.constant 0 : i32
    %0 = arith.cmpi eq, %arg0, %c0_i32 : i32
    %1 = arith.extui %0 : i1 to i32
    %c0_i32_0 = arith.constant 0 : i32
    %2 = arith.cmpi ne, %1, %c0_i32_0 : i32
    scf.if %2 {
      %c0_78 = arith.constant 0 : index
      %103 = memref.load %arg1[%c0_78] : memref<16xi32, #tpu.memory_space<smem>>
      %c0_i32_79 = arith.constant 0 : i32
      %c0_i32_80 = arith.constant 0 : i32
      %c0_i32_81 = arith.constant 0 : i32
      %c0_i32_82 = arith.constant 0 : i32
      %104 = tpu.memref_slice %arg2[%103, %c0_i32_82] : memref<64x128xf32, #tpu.memory_space<any>> -> memref<1x128xf32, #tpu.memory_space<any>>
      %c0_i32_83 = arith.constant 0 : i32
      %c0_i32_84 = arith.constant 0 : i32
      %105 = tpu.memref_slice %arg4[%c0_i32_79, %c0_i32_83, %c0_i32_84] : memref<2x16x128xf32, #tpu.memory_space<vmem>> -> memref<1x1x128xf32, #tpu.memory_space<vmem>>
      %106 = tpu.memref_squeeze %105 : memref<1x1x128xf32, #tpu.memory_space<vmem>> -> memref<1x128xf32, #tpu.memory_space<vmem>>
      %107 = tpu.memref_slice %arg5[%c0_i32_80, %c0_i32_81] : memref<2x16x!tpu.dma_semaphore, #tpu.memory_space<semaphore_mem>> -> memref<1x1x!tpu.dma_semaphore, #tpu.memory_space<semaphore_mem>>
      %108 = tpu.memref_squeeze %107 : memref<1x1x!tpu.dma_semaphore, #tpu.memory_space<semaphore_mem>> -> memref<!tpu.dma_semaphore, #tpu.memory_space<semaphore_mem>>
      tpu.enqueue_dma source(%104 : memref<1x128xf32, #tpu.memory_space<any>>) target(%106 : memref<1x128xf32, #tpu.memory_space<vmem>>) target_semaphore(%108 : memref<!tpu.dma_semaphore, #tpu.memory_space<semaphore_mem>>)
      %c1 = arith.constant 1 : index
      %109 = memref.load %arg1[%c1] : memref<16xi32, #tpu.memory_space<smem>>
      %c0_i32_85 = arith.constant 0 : i32
      %c0_i32_86 = arith.constant 0 : i32
      %c1_i32_87 = arith.constant 1 : i32
      %c0_i32_88 = arith.constant 0 : i32
      %110 = tpu.memref_slice %arg2[%109, %c0_i32_88] : memref<64x128xf32, #tpu.memory_space<any>> -> memref<1x128xf32, #tpu.memory_space<any>>
      %c1_i32_89 = arith.constant 1 : i32
      %c0_i32_90 = arith.constant 0 : i32
      %111 = tpu.memref_slice %arg4[%c0_i32_85, %c1_i32_89, %c0_i32_90] : memref<2x16x128xf32, #tpu.memory_space<vmem>> -> memref<1x1x128xf32, #tpu.memory_space<vmem>>
      %112 = tpu.memref_squeeze %111 : memref<1x1x128xf32, #tpu.memory_space<vmem>> -> memref<1x128xf32, #tpu.memory_space<vmem>>
      %113 = tpu.memref_slice %arg5[%c0_i32_86, %c1_i32_87] : memref<2x16x!tpu.dma_semaphore, #tpu.memory_space<semaphore_mem>> -> memref<1x1x!tpu.dma_semaphore, #tpu.memory_space<semaphore_mem>>
      %114 = tpu.memref_squeeze %113 : memref<1x1x!tpu.dma_semaphore, #tpu.memory_space<semaphore_mem>> -> memref<!tpu.dma_semaphore, #tpu.memory_space<semaphore_mem>>
      tpu.enqueue_dma source(%110 : memref<1x128xf32, #tpu.memory_space<any>>) target(%112 : memref<1x128xf32, #tpu.memory_space<vmem>>) target_semaphore(%114 : memref<!tpu.dma_semaphore, #tpu.memory_space<semaphore_mem>>)
      %c2 = arith.constant 2 : index
      %115 = memref.load %arg1[%c2] : memref<16xi32, #tpu.memory_space<smem>>
      %c0_i32_91 = arith.constant 0 : i32
      %c0_i32_92 = arith.constant 0 : i32
      %c2_i32_93 = arith.constant 2 : i32
      %c0_i32_94 = arith.constant 0 : i32
      %116 = tpu.memref_slice %arg2[%115, %c0_i32_94] : memref<64x128xf32, #tpu.memory_space<any>> -> memref<1x128xf32, #tpu.memory_space<any>>
      %c2_i32_95 = arith.constant 2 : i32
      %c0_i32_96 = arith.constant 0 : i32
      %117 = tpu.memref_slice %arg4[%c0_i32_91, %c2_i32_95, %c0_i32_96] : memref<2x16x128xf32, #tpu.memory_space<vmem>> -> memref<1x1x128xf32, #tpu.memory_space<vmem>>
      %118 = tpu.memref_squeeze %117 : memref<1x1x128xf32, #tpu.memory_space<vmem>> -> memref<1x128xf32, #tpu.memory_space<vmem>>
      %119 = tpu.memref_slice %arg5[%c0_i32_92, %c2_i32_93] : memref<2x16x!tpu.dma_semaphore, #tpu.memory_space<semaphore_mem>> -> memref<1x1x!tpu.dma_semaphore, #tpu.memory_space<semaphore_mem>>
      %120 = tpu.memref_squeeze %119 : memref<1x1x!tpu.dma_semaphore, #tpu.memory_space<semaphore_mem>> -> memref<!tpu.dma_semaphore, #tpu.memory_space<semaphore_mem>>
      tpu.enqueue_dma source(%116 : memref<1x128xf32, #tpu.memory_space<any>>) target(%118 : memref<1x128xf32, #tpu.memory_space<vmem>>) target_semaphore(%120 : memref<!tpu.dma_semaphore, #tpu.memory_space<semaphore_mem>>)
      %c3 = arith.constant 3 : index
      %121 = memref.load %arg1[%c3] : memref<16xi32, #tpu.memory_space<smem>>
      %c0_i32_97 = arith.constant 0 : i32
      %c0_i32_98 = arith.constant 0 : i32
      %c3_i32_99 = arith.constant 3 : i32
      %c0_i32_100 = arith.constant 0 : i32
      %122 = tpu.memref_slice %arg2[%121, %c0_i32_100] : memref<64x128xf32, #tpu.memory_space<any>> -> memref<1x128xf32, #tpu.memory_space<any>>
      %c3_i32_101 = arith.constant 3 : i32
      %c0_i32_102 = arith.constant 0 : i32
      %123 = tpu.memref_slice %arg4[%c0_i32_97, %c3_i32_101, %c0_i32_102] : memref<2x16x128xf32, #tpu.memory_space<vmem>> -> memref<1x1x128xf32, #tpu.memory_space<vmem>>
      %124 = tpu.memref_squeeze %123 : memref<1x1x128xf32, #tpu.memory_space<vmem>> -> memref<1x128xf32, #tpu.memory_space<vmem>>
      %125 = tpu.memref_slice %arg5[%c0_i32_98, %c3_i32_99] : memref<2x16x!tpu.dma_semaphore, #tpu.memory_space<semaphore_mem>> -> memref<1x1x!tpu.dma_semaphore, #tpu.memory_space<semaphore_mem>>
      %126 = tpu.memref_squeeze %125 : memref<1x1x!tpu.dma_semaphore, #tpu.memory_space<semaphore_mem>> -> memref<!tpu.dma_semaphore, #tpu.memory_space<semaphore_mem>>
      tpu.enqueue_dma source(%122 : memref<1x128xf32, #tpu.memory_space<any>>) target(%124 : memref<1x128xf32, #tpu.memory_space<vmem>>) target_semaphore(%126 : memref<!tpu.dma_semaphore, #tpu.memory_space<semaphore_mem>>)
      %c4 = arith.constant 4 : index
      %127 = memref.load %arg1[%c4] : memref<16xi32, #tpu.memory_space<smem>>
      %c0_i32_103 = arith.constant 0 : i32
      %c0_i32_104 = arith.constant 0 : i32
      %c4_i32_105 = arith.constant 4 : i32
      %c0_i32_106 = arith.constant 0 : i32
      %128 = tpu.memref_slice %arg2[%127, %c0_i32_106] : memref<64x128xf32, #tpu.memory_space<any>> -> memref<1x128xf32, #tpu.memory_space<any>>
      %c4_i32_107 = arith.constant 4 : i32
      %c0_i32_108 = arith.constant 0 : i32
      %129 = tpu.memref_slice %arg4[%c0_i32_103, %c4_i32_107, %c0_i32_108] : memref<2x16x128xf32, #tpu.memory_space<vmem>> -> memref<1x1x128xf32, #tpu.memory_space<vmem>>
      %130 = tpu.memref_squeeze %129 : memref<1x1x128xf32, #tpu.memory_space<vmem>> -> memref<1x128xf32, #tpu.memory_space<vmem>>
      %131 = tpu.memref_slice %arg5[%c0_i32_104, %c4_i32_105] : memref<2x16x!tpu.dma_semaphore, #tpu.memory_space<semaphore_mem>> -> memref<1x1x!tpu.dma_semaphore, #tpu.memory_space<semaphore_mem>>
      %132 = tpu.memref_squeeze %131 : memref<1x1x!tpu.dma_semaphore, #tpu.memory_space<semaphore_mem>> -> memref<!tpu.dma_semaphore, #tpu.memory_space<semaphore_mem>>
      tpu.enqueue_dma source(%128 : memref<1x128xf32, #tpu.memory_space<any>>) target(%130 : memref<1x128xf32, #tpu.memory_space<vmem>>) target_semaphore(%132 : memref<!tpu.dma_semaphore, #tpu.memory_space<semaphore_mem>>)
      %c5 = arith.constant 5 : index
      %133 = memref.load %arg1[%c5] : memref<16xi32, #tpu.memory_space<smem>>
      %c0_i32_109 = arith.constant 0 : i32
      %c0_i32_110 = arith.constant 0 : i32
      %c5_i32_111 = arith.constant 5 : i32
      %c0_i32_112 = arith.constant 0 : i32
      %134 = tpu.memref_slice %arg2[%133, %c0_i32_112] : memref<64x128xf32, #tpu.memory_space<any>> -> memref<1x128xf32, #tpu.memory_space<any>>
      %c5_i32_113 = arith.constant 5 : i32
      %c0_i32_114 = arith.constant 0 : i32
      %135 = tpu.memref_slice %arg4[%c0_i32_109, %c5_i32_113, %c0_i32_114] : memref<2x16x128xf32, #tpu.memory_space<vmem>> -> memref<1x1x128xf32, #tpu.memory_space<vmem>>
      %136 = tpu.memref_squeeze %135 : memref<1x1x128xf32, #tpu.memory_space<vmem>> -> memref<1x128xf32, #tpu.memory_space<vmem>>
      %137 = tpu.memref_slice %arg5[%c0_i32_110, %c5_i32_111] : memref<2x16x!tpu.dma_semaphore, #tpu.memory_space<semaphore_mem>> -> memref<1x1x!tpu.dma_semaphore, #tpu.memory_space<semaphore_mem>>
      %138 = tpu.memref_squeeze %137 : memref<1x1x!tpu.dma_semaphore, #tpu.memory_space<semaphore_mem>> -> memref<!tpu.dma_semaphore, #tpu.memory_space<semaphore_mem>>
      tpu.enqueue_dma source(%134 : memref<1x128xf32, #tpu.memory_space<any>>) target(%136 : memref<1x128xf32, #tpu.memory_space<vmem>>) target_semaphore(%138 : memref<!tpu.dma_semaphore, #tpu.memory_space<semaphore_mem>>)
      %c6 = arith.constant 6 : index
      %139 = memref.load %arg1[%c6] : memref<16xi32, #tpu.memory_space<smem>>
      %c0_i32_115 = arith.constant 0 : i32
      %c0_i32_116 = arith.constant 0 : i32
      %c6_i32_117 = arith.constant 6 : i32
      %c0_i32_118 = arith.constant 0 : i32
      %140 = tpu.memref_slice %arg2[%139, %c0_i32_118] : memref<64x128xf32, #tpu.memory_space<any>> -> memref<1x128xf32, #tpu.memory_space<any>>
      %c6_i32_119 = arith.constant 6 : i32
      %c0_i32_120 = arith.constant 0 : i32
      %141 = tpu.memref_slice %arg4[%c0_i32_115, %c6_i32_119, %c0_i32_120] : memref<2x16x128xf32, #tpu.memory_space<vmem>> -> memref<1x1x128xf32, #tpu.memory_space<vmem>>
      %142 = tpu.memref_squeeze %141 : memref<1x1x128xf32, #tpu.memory_space<vmem>> -> memref<1x128xf32, #tpu.memory_space<vmem>>
      %143 = tpu.memref_slice %arg5[%c0_i32_116, %c6_i32_117] : memref<2x16x!tpu.dma_semaphore, #tpu.memory_space<semaphore_mem>> -> memref<1x1x!tpu.dma_semaphore, #tpu.memory_space<semaphore_mem>>
      %144 = tpu.memref_squeeze %143 : memref<1x1x!tpu.dma_semaphore, #tpu.memory_space<semaphore_mem>> -> memref<!tpu.dma_semaphore, #tpu.memory_space<semaphore_mem>>
      tpu.enqueue_dma source(%140 : memref<1x128xf32, #tpu.memory_space<any>>) target(%142 : memref<1x128xf32, #tpu.memory_space<vmem>>) target_semaphore(%144 : memref<!tpu.dma_semaphore, #tpu.memory_space<semaphore_mem>>)
      %c7 = arith.constant 7 : index
      %145 = memref.load %arg1[%c7] : memref<16xi32, #tpu.memory_space<smem>>
      %c0_i32_121 = arith.constant 0 : i32
      %c0_i32_122 = arith.constant 0 : i32
      %c7_i32_123 = arith.constant 7 : i32
      %c0_i32_124 = arith.constant 0 : i32
      %146 = tpu.memref_slice %arg2[%145, %c0_i32_124] : memref<64x128xf32, #tpu.memory_space<any>> -> memref<1x128xf32, #tpu.memory_space<any>>
      %c7_i32_125 = arith.constant 7 : i32
      %c0_i32_126 = arith.constant 0 : i32
      %147 = tpu.memref_slice %arg4[%c0_i32_121, %c7_i32_125, %c0_i32_126] : memref<2x16x128xf32, #tpu.memory_space<vmem>> -> memref<1x1x128xf32, #tpu.memory_space<vmem>>
      %148 = tpu.memref_squeeze %147 : memref<1x1x128xf32, #tpu.memory_space<vmem>> -> memref<1x128xf32, #tpu.memory_space<vmem>>
      %149 = tpu.memref_slice %arg5[%c0_i32_122, %c7_i32_123] : memref<2x16x!tpu.dma_semaphore, #tpu.memory_space<semaphore_mem>> -> memref<1x1x!tpu.dma_semaphore, #tpu.memory_space<semaphore_mem>>
      %150 = tpu.memref_squeeze %149 : memref<1x1x!tpu.dma_semaphore, #tpu.memory_space<semaphore_mem>> -> memref<!tpu.dma_semaphore, #tpu.memory_space<semaphore_mem>>
      tpu.enqueue_dma source(%146 : memref<1x128xf32, #tpu.memory_space<any>>) target(%148 : memref<1x128xf32, #tpu.memory_space<vmem>>) target_semaphore(%150 : memref<!tpu.dma_semaphore, #tpu.memory_space<semaphore_mem>>)
      %c8 = arith.constant 8 : index
      %151 = memref.load %arg1[%c8] : memref<16xi32, #tpu.memory_space<smem>>
      %c0_i32_127 = arith.constant 0 : i32
      %c0_i32_128 = arith.constant 0 : i32
      %c8_i32_129 = arith.constant 8 : i32
      %c0_i32_130 = arith.constant 0 : i32
      %152 = tpu.memref_slice %arg2[%151, %c0_i32_130] : memref<64x128xf32, #tpu.memory_space<any>> -> memref<1x128xf32, #tpu.memory_space<any>>
      %c8_i32_131 = arith.constant 8 : i32
      %c0_i32_132 = arith.constant 0 : i32
      %153 = tpu.memref_slice %arg4[%c0_i32_127, %c8_i32_131, %c0_i32_132] : memref<2x16x128xf32, #tpu.memory_space<vmem>> -> memref<1x1x128xf32, #tpu.memory_space<vmem>>
      %154 = tpu.memref_squeeze %153 : memref<1x1x128xf32, #tpu.memory_space<vmem>> -> memref<1x128xf32, #tpu.memory_space<vmem>>
      %155 = tpu.memref_slice %arg5[%c0_i32_128, %c8_i32_129] : memref<2x16x!tpu.dma_semaphore, #tpu.memory_space<semaphore_mem>> -> memref<1x1x!tpu.dma_semaphore, #tpu.memory_space<semaphore_mem>>
      %156 = tpu.memref_squeeze %155 : memref<1x1x!tpu.dma_semaphore, #tpu.memory_space<semaphore_mem>> -> memref<!tpu.dma_semaphore, #tpu.memory_space<semaphore_mem>>
      tpu.enqueue_dma source(%152 : memref<1x128xf32, #tpu.memory_space<any>>) target(%154 : memref<1x128xf32, #tpu.memory_space<vmem>>) target_semaphore(%156 : memref<!tpu.dma_semaphore, #tpu.memory_space<semaphore_mem>>)
      %c9 = arith.constant 9 : index
      %157 = memref.load %arg1[%c9] : memref<16xi32, #tpu.memory_space<smem>>
      %c0_i32_133 = arith.constant 0 : i32
      %c0_i32_134 = arith.constant 0 : i32
      %c9_i32_135 = arith.constant 9 : i32
      %c0_i32_136 = arith.constant 0 : i32
      %158 = tpu.memref_slice %arg2[%157, %c0_i32_136] : memref<64x128xf32, #tpu.memory_space<any>> -> memref<1x128xf32, #tpu.memory_space<any>>
      %c9_i32_137 = arith.constant 9 : i32
      %c0_i32_138 = arith.constant 0 : i32
      %159 = tpu.memref_slice %arg4[%c0_i32_133, %c9_i32_137, %c0_i32_138] : memref<2x16x128xf32, #tpu.memory_space<vmem>> -> memref<1x1x128xf32, #tpu.memory_space<vmem>>
      %160 = tpu.memref_squeeze %159 : memref<1x1x128xf32, #tpu.memory_space<vmem>> -> memref<1x128xf32, #tpu.memory_space<vmem>>
      %161 = tpu.memref_slice %arg5[%c0_i32_134, %c9_i32_135] : memref<2x16x!tpu.dma_semaphore, #tpu.memory_space<semaphore_mem>> -> memref<1x1x!tpu.dma_semaphore, #tpu.memory_space<semaphore_mem>>
      %162 = tpu.memref_squeeze %161 : memref<1x1x!tpu.dma_semaphore, #tpu.memory_space<semaphore_mem>> -> memref<!tpu.dma_semaphore, #tpu.memory_space<semaphore_mem>>
      tpu.enqueue_dma source(%158 : memref<1x128xf32, #tpu.memory_space<any>>) target(%160 : memref<1x128xf32, #tpu.memory_space<vmem>>) target_semaphore(%162 : memref<!tpu.dma_semaphore, #tpu.memory_space<semaphore_mem>>)
      %c10 = arith.constant 10 : index
      %163 = memref.load %arg1[%c10] : memref<16xi32, #tpu.memory_space<smem>>
      %c0_i32_139 = arith.constant 0 : i32
      %c0_i32_140 = arith.constant 0 : i32
      %c10_i32_141 = arith.constant 10 : i32
      %c0_i32_142 = arith.constant 0 : i32
      %164 = tpu.memref_slice %arg2[%163, %c0_i32_142] : memref<64x128xf32, #tpu.memory_space<any>> -> memref<1x128xf32, #tpu.memory_space<any>>
      %c10_i32_143 = arith.constant 10 : i32
      %c0_i32_144 = arith.constant 0 : i32
      %165 = tpu.memref_slice %arg4[%c0_i32_139, %c10_i32_143, %c0_i32_144] : memref<2x16x128xf32, #tpu.memory_space<vmem>> -> memref<1x1x128xf32, #tpu.memory_space<vmem>>
      %166 = tpu.memref_squeeze %165 : memref<1x1x128xf32, #tpu.memory_space<vmem>> -> memref<1x128xf32, #tpu.memory_space<vmem>>
      %167 = tpu.memref_slice %arg5[%c0_i32_140, %c10_i32_141] : memref<2x16x!tpu.dma_semaphore, #tpu.memory_space<semaphore_mem>> -> memref<1x1x!tpu.dma_semaphore, #tpu.memory_space<semaphore_mem>>
      %168 = tpu.memref_squeeze %167 : memref<1x1x!tpu.dma_semaphore, #tpu.memory_space<semaphore_mem>> -> memref<!tpu.dma_semaphore, #tpu.memory_space<semaphore_mem>>
      tpu.enqueue_dma source(%164 : memref<1x128xf32, #tpu.memory_space<any>>) target(%166 : memref<1x128xf32, #tpu.memory_space<vmem>>) target_semaphore(%168 : memref<!tpu.dma_semaphore, #tpu.memory_space<semaphore_mem>>)
      %c11 = arith.constant 11 : index
      %169 = memref.load %arg1[%c11] : memref<16xi32, #tpu.memory_space<smem>>
      %c0_i32_145 = arith.constant 0 : i32
      %c0_i32_146 = arith.constant 0 : i32
      %c11_i32_147 = arith.constant 11 : i32
      %c0_i32_148 = arith.constant 0 : i32
      %170 = tpu.memref_slice %arg2[%169, %c0_i32_148] : memref<64x128xf32, #tpu.memory_space<any>> -> memref<1x128xf32, #tpu.memory_space<any>>
      %c11_i32_149 = arith.constant 11 : i32
      %c0_i32_150 = arith.constant 0 : i32
      %171 = tpu.memref_slice %arg4[%c0_i32_145, %c11_i32_149, %c0_i32_150] : memref<2x16x128xf32, #tpu.memory_space<vmem>> -> memref<1x1x128xf32, #tpu.memory_space<vmem>>
      %172 = tpu.memref_squeeze %171 : memref<1x1x128xf32, #tpu.memory_space<vmem>> -> memref<1x128xf32, #tpu.memory_space<vmem>>
      %173 = tpu.memref_slice %arg5[%c0_i32_146, %c11_i32_147] : memref<2x16x!tpu.dma_semaphore, #tpu.memory_space<semaphore_mem>> -> memref<1x1x!tpu.dma_semaphore, #tpu.memory_space<semaphore_mem>>
      %174 = tpu.memref_squeeze %173 : memref<1x1x!tpu.dma_semaphore, #tpu.memory_space<semaphore_mem>> -> memref<!tpu.dma_semaphore, #tpu.memory_space<semaphore_mem>>
      tpu.enqueue_dma source(%170 : memref<1x128xf32, #tpu.memory_space<any>>) target(%172 : memref<1x128xf32, #tpu.memory_space<vmem>>) target_semaphore(%174 : memref<!tpu.dma_semaphore, #tpu.memory_space<semaphore_mem>>)
      %c12 = arith.constant 12 : index
      %175 = memref.load %arg1[%c12] : memref<16xi32, #tpu.memory_space<smem>>
      %c0_i32_151 = arith.constant 0 : i32
      %c0_i32_152 = arith.constant 0 : i32
      %c12_i32_153 = arith.constant 12 : i32
      %c0_i32_154 = arith.constant 0 : i32
      %176 = tpu.memref_slice %arg2[%175, %c0_i32_154] : memref<64x128xf32, #tpu.memory_space<any>> -> memref<1x128xf32, #tpu.memory_space<any>>
      %c12_i32_155 = arith.constant 12 : i32
      %c0_i32_156 = arith.constant 0 : i32
      %177 = tpu.memref_slice %arg4[%c0_i32_151, %c12_i32_155, %c0_i32_156] : memref<2x16x128xf32, #tpu.memory_space<vmem>> -> memref<1x1x128xf32, #tpu.memory_space<vmem>>
      %178 = tpu.memref_squeeze %177 : memref<1x1x128xf32, #tpu.memory_space<vmem>> -> memref<1x128xf32, #tpu.memory_space<vmem>>
      %179 = tpu.memref_slice %arg5[%c0_i32_152, %c12_i32_153] : memref<2x16x!tpu.dma_semaphore, #tpu.memory_space<semaphore_mem>> -> memref<1x1x!tpu.dma_semaphore, #tpu.memory_space<semaphore_mem>>
      %180 = tpu.memref_squeeze %179 : memref<1x1x!tpu.dma_semaphore, #tpu.memory_space<semaphore_mem>> -> memref<!tpu.dma_semaphore, #tpu.memory_space<semaphore_mem>>
      tpu.enqueue_dma source(%176 : memref<1x128xf32, #tpu.memory_space<any>>) target(%178 : memref<1x128xf32, #tpu.memory_space<vmem>>) target_semaphore(%180 : memref<!tpu.dma_semaphore, #tpu.memory_space<semaphore_mem>>)
      %c13 = arith.constant 13 : index
      %181 = memref.load %arg1[%c13] : memref<16xi32, #tpu.memory_space<smem>>
      %c0_i32_157 = arith.constant 0 : i32
      %c0_i32_158 = arith.constant 0 : i32
      %c13_i32_159 = arith.constant 13 : i32
      %c0_i32_160 = arith.constant 0 : i32
      %182 = tpu.memref_slice %arg2[%181, %c0_i32_160] : memref<64x128xf32, #tpu.memory_space<any>> -> memref<1x128xf32, #tpu.memory_space<any>>
      %c13_i32_161 = arith.constant 13 : i32
      %c0_i32_162 = arith.constant 0 : i32
      %183 = tpu.memref_slice %arg4[%c0_i32_157, %c13_i32_161, %c0_i32_162] : memref<2x16x128xf32, #tpu.memory_space<vmem>> -> memref<1x1x128xf32, #tpu.memory_space<vmem>>
      %184 = tpu.memref_squeeze %183 : memref<1x1x128xf32, #tpu.memory_space<vmem>> -> memref<1x128xf32, #tpu.memory_space<vmem>>
      %185 = tpu.memref_slice %arg5[%c0_i32_158, %c13_i32_159] : memref<2x16x!tpu.dma_semaphore, #tpu.memory_space<semaphore_mem>> -> memref<1x1x!tpu.dma_semaphore, #tpu.memory_space<semaphore_mem>>
      %186 = tpu.memref_squeeze %185 : memref<1x1x!tpu.dma_semaphore, #tpu.memory_space<semaphore_mem>> -> memref<!tpu.dma_semaphore, #tpu.memory_space<semaphore_mem>>
      tpu.enqueue_dma source(%182 : memref<1x128xf32, #tpu.memory_space<any>>) target(%184 : memref<1x128xf32, #tpu.memory_space<vmem>>) target_semaphore(%186 : memref<!tpu.dma_semaphore, #tpu.memory_space<semaphore_mem>>)
      %c14 = arith.constant 14 : index
      %187 = memref.load %arg1[%c14] : memref<16xi32, #tpu.memory_space<smem>>
      %c0_i32_163 = arith.constant 0 : i32
      %c0_i32_164 = arith.constant 0 : i32
      %c14_i32_165 = arith.constant 14 : i32
      %c0_i32_166 = arith.constant 0 : i32
      %188 = tpu.memref_slice %arg2[%187, %c0_i32_166] : memref<64x128xf32, #tpu.memory_space<any>> -> memref<1x128xf32, #tpu.memory_space<any>>
      %c14_i32_167 = arith.constant 14 : i32
      %c0_i32_168 = arith.constant 0 : i32
      %189 = tpu.memref_slice %arg4[%c0_i32_163, %c14_i32_167, %c0_i32_168] : memref<2x16x128xf32, #tpu.memory_space<vmem>> -> memref<1x1x128xf32, #tpu.memory_space<vmem>>
      %190 = tpu.memref_squeeze %189 : memref<1x1x128xf32, #tpu.memory_space<vmem>> -> memref<1x128xf32, #tpu.memory_space<vmem>>
      %191 = tpu.memref_slice %arg5[%c0_i32_164, %c14_i32_165] : memref<2x16x!tpu.dma_semaphore, #tpu.memory_space<semaphore_mem>> -> memref<1x1x!tpu.dma_semaphore, #tpu.memory_space<semaphore_mem>>
      %192 = tpu.memref_squeeze %191 : memref<1x1x!tpu.dma_semaphore, #tpu.memory_space<semaphore_mem>> -> memref<!tpu.dma_semaphore, #tpu.memory_space<semaphore_mem>>
      tpu.enqueue_dma source(%188 : memref<1x128xf32, #tpu.memory_space<any>>) target(%190 : memref<1x128xf32, #tpu.memory_space<vmem>>) target_semaphore(%192 : memref<!tpu.dma_semaphore, #tpu.memory_space<semaphore_mem>>)
      %c15 = arith.constant 15 : index
      %193 = memref.load %arg1[%c15] : memref<16xi32, #tpu.memory_space<smem>>
      %c0_i32_169 = arith.constant 0 : i32
      %c0_i32_170 = arith.constant 0 : i32
      %c15_i32_171 = arith.constant 15 : i32
      %c0_i32_172 = arith.constant 0 : i32
      %194 = tpu.memref_slice %arg2[%193, %c0_i32_172] : memref<64x128xf32, #tpu.memory_space<any>> -> memref<1x128xf32, #tpu.memory_space<any>>
      %c15_i32_173 = arith.constant 15 : i32
      %c0_i32_174 = arith.constant 0 : i32
      %195 = tpu.memref_slice %arg4[%c0_i32_169, %c15_i32_173, %c0_i32_174] : memref<2x16x128xf32, #tpu.memory_space<vmem>> -> memref<1x1x128xf32, #tpu.memory_space<vmem>>
      %196 = tpu.memref_squeeze %195 : memref<1x1x128xf32, #tpu.memory_space<vmem>> -> memref<1x128xf32, #tpu.memory_space<vmem>>
      %197 = tpu.memref_slice %arg5[%c0_i32_170, %c15_i32_171] : memref<2x16x!tpu.dma_semaphore, #tpu.memory_space<semaphore_mem>> -> memref<1x1x!tpu.dma_semaphore, #tpu.memory_space<semaphore_mem>>
      %198 = tpu.memref_squeeze %197 : memref<1x1x!tpu.dma_semaphore, #tpu.memory_space<semaphore_mem>> -> memref<!tpu.dma_semaphore, #tpu.memory_space<semaphore_mem>>
      tpu.enqueue_dma source(%194 : memref<1x128xf32, #tpu.memory_space<any>>) target(%196 : memref<1x128xf32, #tpu.memory_space<vmem>>) target_semaphore(%198 : memref<!tpu.dma_semaphore, #tpu.memory_space<semaphore_mem>>)
    } else {
    }
    %c1_i32 = arith.constant 1 : i32
    %3 = arith.addi %arg0, %c1_i32 : i32
    %c1_i32_1 = arith.constant 1 : i32
    %4 = arith.cmpi slt, %3, %c1_i32_1 : i32
    %5 = arith.extui %4 : i1 to i32
    %c0_i32_2 = arith.constant 0 : i32
    %6 = arith.cmpi ne, %5, %c0_i32_2 : i32
    scf.if %6 {
      %c1_i32_78 = arith.constant 1 : i32
      %103 = arith.addi %arg0, %c1_i32_78 : i32
      %c1_i32_79 = arith.constant 1 : i32
      %104 = arith.addi %arg0, %c1_i32_79 : i32
      %c2_i32_80 = arith.constant 2 : i32
      %c0_i32_81 = arith.constant 0 : i32
      %105 = arith.cmpi eq, %c2_i32_80, %c0_i32_81 : i32
      %c1_i32_82 = arith.constant 1 : i32
      %106 = arith.select %105, %c1_i32_82, %c2_i32_80 : i32
      %107 = arith.remsi %104, %106 : i32
      %c0_i32_83 = arith.constant 0 : i32
      %108 = arith.cmpi ne, %107, %c0_i32_83 : i32
      %c0_i32_84 = arith.constant 0 : i32
      %109 = arith.cmpi slt, %107, %c0_i32_84 : i32
      %c0_i32_85 = arith.constant 0 : i32
      %110 = arith.cmpi slt, %106, %c0_i32_85 : i32
      %111 = arith.xori %109, %110 : i1
      %112 = arith.andi %111, %108 : i1
      %113 = arith.addi %107, %106 : i32
      %114 = arith.select %112, %113, %107 : i32
      %c16_i32 = arith.constant 16 : i32
      %115 = arith.muli %103, %c16_i32 : i32
      %c0_i32_86 = arith.constant 0 : i32
      %116 = arith.addi %115, %c0_i32_86 : i32
      %117 = arith.index_cast %116 : i32 to index
      %118 = memref.load %arg1[%117] : memref<16xi32, #tpu.memory_space<smem>>
      %c0_i32_87 = arith.constant 0 : i32
      %c0_i32_88 = arith.constant 0 : i32
      %119 = tpu.memref_slice %arg2[%118, %c0_i32_88] : memref<64x128xf32, #tpu.memory_space<any>> -> memref<1x128xf32, #tpu.memory_space<any>>
      %c0_i32_89 = arith.constant 0 : i32
      %c0_i32_90 = arith.constant 0 : i32
      %120 = tpu.memref_slice %arg4[%114, %c0_i32_89, %c0_i32_90] : memref<2x16x128xf32, #tpu.memory_space<vmem>> -> memref<1x1x128xf32, #tpu.memory_space<vmem>>
      %121 = tpu.memref_squeeze %120 : memref<1x1x128xf32, #tpu.memory_space<vmem>> -> memref<1x128xf32, #tpu.memory_space<vmem>>
      %122 = tpu.memref_slice %arg5[%114, %c0_i32_87] : memref<2x16x!tpu.dma_semaphore, #tpu.memory_space<semaphore_mem>> -> memref<1x1x!tpu.dma_semaphore, #tpu.memory_space<semaphore_mem>>
      %123 = tpu.memref_squeeze %122 : memref<1x1x!tpu.dma_semaphore, #tpu.memory_space<semaphore_mem>> -> memref<!tpu.dma_semaphore, #tpu.memory_space<semaphore_mem>>
      tpu.enqueue_dma source(%119 : memref<1x128xf32, #tpu.memory_space<any>>) target(%121 : memref<1x128xf32, #tpu.memory_space<vmem>>) target_semaphore(%123 : memref<!tpu.dma_semaphore, #tpu.memory_space<semaphore_mem>>)
      %c1_i32_91 = arith.constant 1 : i32
      %124 = arith.addi %115, %c1_i32_91 : i32
      %125 = arith.index_cast %124 : i32 to index
      %126 = memref.load %arg1[%125] : memref<16xi32, #tpu.memory_space<smem>>
      %c1_i32_92 = arith.constant 1 : i32
      %c0_i32_93 = arith.constant 0 : i32
      %127 = tpu.memref_slice %arg2[%126, %c0_i32_93] : memref<64x128xf32, #tpu.memory_space<any>> -> memref<1x128xf32, #tpu.memory_space<any>>
      %c1_i32_94 = arith.constant 1 : i32
      %c0_i32_95 = arith.constant 0 : i32
      %128 = tpu.memref_slice %arg4[%114, %c1_i32_94, %c0_i32_95] : memref<2x16x128xf32, #tpu.memory_space<vmem>> -> memref<1x1x128xf32, #tpu.memory_space<vmem>>
      %129 = tpu.memref_squeeze %128 : memref<1x1x128xf32, #tpu.memory_space<vmem>> -> memref<1x128xf32, #tpu.memory_space<vmem>>
      %130 = tpu.memref_slice %arg5[%114, %c1_i32_92] : memref<2x16x!tpu.dma_semaphore, #tpu.memory_space<semaphore_mem>> -> memref<1x1x!tpu.dma_semaphore, #tpu.memory_space<semaphore_mem>>
      %131 = tpu.memref_squeeze %130 : memref<1x1x!tpu.dma_semaphore, #tpu.memory_space<semaphore_mem>> -> memref<!tpu.dma_semaphore, #tpu.memory_space<semaphore_mem>>
      tpu.enqueue_dma source(%127 : memref<1x128xf32, #tpu.memory_space<any>>) target(%129 : memref<1x128xf32, #tpu.memory_space<vmem>>) target_semaphore(%131 : memref<!tpu.dma_semaphore, #tpu.memory_space<semaphore_mem>>)
      %c2_i32_96 = arith.constant 2 : i32
      %132 = arith.addi %115, %c2_i32_96 : i32
      %133 = arith.index_cast %132 : i32 to index
      %134 = memref.load %arg1[%133] : memref<16xi32, #tpu.memory_space<smem>>
      %c2_i32_97 = arith.constant 2 : i32
      %c0_i32_98 = arith.constant 0 : i32
      %135 = tpu.memref_slice %arg2[%134, %c0_i32_98] : memref<64x128xf32, #tpu.memory_space<any>> -> memref<1x128xf32, #tpu.memory_space<any>>
      %c2_i32_99 = arith.constant 2 : i32
      %c0_i32_100 = arith.constant 0 : i32
      %136 = tpu.memref_slice %arg4[%114, %c2_i32_99, %c0_i32_100] : memref<2x16x128xf32, #tpu.memory_space<vmem>> -> memref<1x1x128xf32, #tpu.memory_space<vmem>>
      %137 = tpu.memref_squeeze %136 : memref<1x1x128xf32, #tpu.memory_space<vmem>> -> memref<1x128xf32, #tpu.memory_space<vmem>>
      %138 = tpu.memref_slice %arg5[%114, %c2_i32_97] : memref<2x16x!tpu.dma_semaphore, #tpu.memory_space<semaphore_mem>> -> memref<1x1x!tpu.dma_semaphore, #tpu.memory_space<semaphore_mem>>
      %139 = tpu.memref_squeeze %138 : memref<1x1x!tpu.dma_semaphore, #tpu.memory_space<semaphore_mem>> -> memref<!tpu.dma_semaphore, #tpu.memory_space<semaphore_mem>>
      tpu.enqueue_dma source(%135 : memref<1x128xf32, #tpu.memory_space<any>>) target(%137 : memref<1x128xf32, #tpu.memory_space<vmem>>) target_semaphore(%139 : memref<!tpu.dma_semaphore, #tpu.memory_space<semaphore_mem>>)
      %c3_i32_101 = arith.constant 3 : i32
      %140 = arith.addi %115, %c3_i32_101 : i32
      %141 = arith.index_cast %140 : i32 to index
      %142 = memref.load %arg1[%141] : memref<16xi32, #tpu.memory_space<smem>>
      %c3_i32_102 = arith.constant 3 : i32
      %c0_i32_103 = arith.constant 0 : i32
      %143 = tpu.memref_slice %arg2[%142, %c0_i32_103] : memref<64x128xf32, #tpu.memory_space<any>> -> memref<1x128xf32, #tpu.memory_space<any>>
      %c3_i32_104 = arith.constant 3 : i32
      %c0_i32_105 = arith.constant 0 : i32
      %144 = tpu.memref_slice %arg4[%114, %c3_i32_104, %c0_i32_105] : memref<2x16x128xf32, #tpu.memory_space<vmem>> -> memref<1x1x128xf32, #tpu.memory_space<vmem>>
      %145 = tpu.memref_squeeze %144 : memref<1x1x128xf32, #tpu.memory_space<vmem>> -> memref<1x128xf32, #tpu.memory_space<vmem>>
      %146 = tpu.memref_slice %arg5[%114, %c3_i32_102] : memref<2x16x!tpu.dma_semaphore, #tpu.memory_space<semaphore_mem>> -> memref<1x1x!tpu.dma_semaphore, #tpu.memory_space<semaphore_mem>>
      %147 = tpu.memref_squeeze %146 : memref<1x1x!tpu.dma_semaphore, #tpu.memory_space<semaphore_mem>> -> memref<!tpu.dma_semaphore, #tpu.memory_space<semaphore_mem>>
      tpu.enqueue_dma source(%143 : memref<1x128xf32, #tpu.memory_space<any>>) target(%145 : memref<1x128xf32, #tpu.memory_space<vmem>>) target_semaphore(%147 : memref<!tpu.dma_semaphore, #tpu.memory_space<semaphore_mem>>)
      %c4_i32_106 = arith.constant 4 : i32
      %148 = arith.addi %115, %c4_i32_106 : i32
      %149 = arith.index_cast %148 : i32 to index
      %150 = memref.load %arg1[%149] : memref<16xi32, #tpu.memory_space<smem>>
      %c4_i32_107 = arith.constant 4 : i32
      %c0_i32_108 = arith.constant 0 : i32
      %151 = tpu.memref_slice %arg2[%150, %c0_i32_108] : memref<64x128xf32, #tpu.memory_space<any>> -> memref<1x128xf32, #tpu.memory_space<any>>
      %c4_i32_109 = arith.constant 4 : i32
      %c0_i32_110 = arith.constant 0 : i32
      %152 = tpu.memref_slice %arg4[%114, %c4_i32_109, %c0_i32_110] : memref<2x16x128xf32, #tpu.memory_space<vmem>> -> memref<1x1x128xf32, #tpu.memory_space<vmem>>
      %153 = tpu.memref_squeeze %152 : memref<1x1x128xf32, #tpu.memory_space<vmem>> -> memref<1x128xf32, #tpu.memory_space<vmem>>
      %154 = tpu.memref_slice %arg5[%114, %c4_i32_107] : memref<2x16x!tpu.dma_semaphore, #tpu.memory_space<semaphore_mem>> -> memref<1x1x!tpu.dma_semaphore, #tpu.memory_space<semaphore_mem>>
      %155 = tpu.memref_squeeze %154 : memref<1x1x!tpu.dma_semaphore, #tpu.memory_space<semaphore_mem>> -> memref<!tpu.dma_semaphore, #tpu.memory_space<semaphore_mem>>
      tpu.enqueue_dma source(%151 : memref<1x128xf32, #tpu.memory_space<any>>) target(%153 : memref<1x128xf32, #tpu.memory_space<vmem>>) target_semaphore(%155 : memref<!tpu.dma_semaphore, #tpu.memory_space<semaphore_mem>>)
      %c5_i32_111 = arith.constant 5 : i32
      %156 = arith.addi %115, %c5_i32_111 : i32
      %157 = arith.index_cast %156 : i32 to index
      %158 = memref.load %arg1[%157] : memref<16xi32, #tpu.memory_space<smem>>
      %c5_i32_112 = arith.constant 5 : i32
      %c0_i32_113 = arith.constant 0 : i32
      %159 = tpu.memref_slice %arg2[%158, %c0_i32_113] : memref<64x128xf32, #tpu.memory_space<any>> -> memref<1x128xf32, #tpu.memory_space<any>>
      %c5_i32_114 = arith.constant 5 : i32
      %c0_i32_115 = arith.constant 0 : i32
      %160 = tpu.memref_slice %arg4[%114, %c5_i32_114, %c0_i32_115] : memref<2x16x128xf32, #tpu.memory_space<vmem>> -> memref<1x1x128xf32, #tpu.memory_space<vmem>>
      %161 = tpu.memref_squeeze %160 : memref<1x1x128xf32, #tpu.memory_space<vmem>> -> memref<1x128xf32, #tpu.memory_space<vmem>>
      %162 = tpu.memref_slice %arg5[%114, %c5_i32_112] : memref<2x16x!tpu.dma_semaphore, #tpu.memory_space<semaphore_mem>> -> memref<1x1x!tpu.dma_semaphore, #tpu.memory_space<semaphore_mem>>
      %163 = tpu.memref_squeeze %162 : memref<1x1x!tpu.dma_semaphore, #tpu.memory_space<semaphore_mem>> -> memref<!tpu.dma_semaphore, #tpu.memory_space<semaphore_mem>>
      tpu.enqueue_dma source(%159 : memref<1x128xf32, #tpu.memory_space<any>>) target(%161 : memref<1x128xf32, #tpu.memory_space<vmem>>) target_semaphore(%163 : memref<!tpu.dma_semaphore, #tpu.memory_space<semaphore_mem>>)
      %c6_i32_116 = arith.constant 6 : i32
      %164 = arith.addi %115, %c6_i32_116 : i32
      %165 = arith.index_cast %164 : i32 to index
      %166 = memref.load %arg1[%165] : memref<16xi32, #tpu.memory_space<smem>>
      %c6_i32_117 = arith.constant 6 : i32
      %c0_i32_118 = arith.constant 0 : i32
      %167 = tpu.memref_slice %arg2[%166, %c0_i32_118] : memref<64x128xf32, #tpu.memory_space<any>> -> memref<1x128xf32, #tpu.memory_space<any>>
      %c6_i32_119 = arith.constant 6 : i32
      %c0_i32_120 = arith.constant 0 : i32
      %168 = tpu.memref_slice %arg4[%114, %c6_i32_119, %c0_i32_120] : memref<2x16x128xf32, #tpu.memory_space<vmem>> -> memref<1x1x128xf32, #tpu.memory_space<vmem>>
      %169 = tpu.memref_squeeze %168 : memref<1x1x128xf32, #tpu.memory_space<vmem>> -> memref<1x128xf32, #tpu.memory_space<vmem>>
      %170 = tpu.memref_slice %arg5[%114, %c6_i32_117] : memref<2x16x!tpu.dma_semaphore, #tpu.memory_space<semaphore_mem>> -> memref<1x1x!tpu.dma_semaphore, #tpu.memory_space<semaphore_mem>>
      %171 = tpu.memref_squeeze %170 : memref<1x1x!tpu.dma_semaphore, #tpu.memory_space<semaphore_mem>> -> memref<!tpu.dma_semaphore, #tpu.memory_space<semaphore_mem>>
      tpu.enqueue_dma source(%167 : memref<1x128xf32, #tpu.memory_space<any>>) target(%169 : memref<1x128xf32, #tpu.memory_space<vmem>>) target_semaphore(%171 : memref<!tpu.dma_semaphore, #tpu.memory_space<semaphore_mem>>)
      %c7_i32_121 = arith.constant 7 : i32
      %172 = arith.addi %115, %c7_i32_121 : i32
      %173 = arith.index_cast %172 : i32 to index
      %174 = memref.load %arg1[%173] : memref<16xi32, #tpu.memory_space<smem>>
      %c7_i32_122 = arith.constant 7 : i32
      %c0_i32_123 = arith.constant 0 : i32
      %175 = tpu.memref_slice %arg2[%174, %c0_i32_123] : memref<64x128xf32, #tpu.memory_space<any>> -> memref<1x128xf32, #tpu.memory_space<any>>
      %c7_i32_124 = arith.constant 7 : i32
      %c0_i32_125 = arith.constant 0 : i32
      %176 = tpu.memref_slice %arg4[%114, %c7_i32_124, %c0_i32_125] : memref<2x16x128xf32, #tpu.memory_space<vmem>> -> memref<1x1x128xf32, #tpu.memory_space<vmem>>
      %177 = tpu.memref_squeeze %176 : memref<1x1x128xf32, #tpu.memory_space<vmem>> -> memref<1x128xf32, #tpu.memory_space<vmem>>
      %178 = tpu.memref_slice %arg5[%114, %c7_i32_122] : memref<2x16x!tpu.dma_semaphore, #tpu.memory_space<semaphore_mem>> -> memref<1x1x!tpu.dma_semaphore, #tpu.memory_space<semaphore_mem>>
      %179 = tpu.memref_squeeze %178 : memref<1x1x!tpu.dma_semaphore, #tpu.memory_space<semaphore_mem>> -> memref<!tpu.dma_semaphore, #tpu.memory_space<semaphore_mem>>
      tpu.enqueue_dma source(%175 : memref<1x128xf32, #tpu.memory_space<any>>) target(%177 : memref<1x128xf32, #tpu.memory_space<vmem>>) target_semaphore(%179 : memref<!tpu.dma_semaphore, #tpu.memory_space<semaphore_mem>>)
      %c8_i32_126 = arith.constant 8 : i32
      %180 = arith.addi %115, %c8_i32_126 : i32
      %181 = arith.index_cast %180 : i32 to index
      %182 = memref.load %arg1[%181] : memref<16xi32, #tpu.memory_space<smem>>
      %c8_i32_127 = arith.constant 8 : i32
      %c0_i32_128 = arith.constant 0 : i32
      %183 = tpu.memref_slice %arg2[%182, %c0_i32_128] : memref<64x128xf32, #tpu.memory_space<any>> -> memref<1x128xf32, #tpu.memory_space<any>>
      %c8_i32_129 = arith.constant 8 : i32
      %c0_i32_130 = arith.constant 0 : i32
      %184 = tpu.memref_slice %arg4[%114, %c8_i32_129, %c0_i32_130] : memref<2x16x128xf32, #tpu.memory_space<vmem>> -> memref<1x1x128xf32, #tpu.memory_space<vmem>>
      %185 = tpu.memref_squeeze %184 : memref<1x1x128xf32, #tpu.memory_space<vmem>> -> memref<1x128xf32, #tpu.memory_space<vmem>>
      %186 = tpu.memref_slice %arg5[%114, %c8_i32_127] : memref<2x16x!tpu.dma_semaphore, #tpu.memory_space<semaphore_mem>> -> memref<1x1x!tpu.dma_semaphore, #tpu.memory_space<semaphore_mem>>
      %187 = tpu.memref_squeeze %186 : memref<1x1x!tpu.dma_semaphore, #tpu.memory_space<semaphore_mem>> -> memref<!tpu.dma_semaphore, #tpu.memory_space<semaphore_mem>>
      tpu.enqueue_dma source(%183 : memref<1x128xf32, #tpu.memory_space<any>>) target(%185 : memref<1x128xf32, #tpu.memory_space<vmem>>) target_semaphore(%187 : memref<!tpu.dma_semaphore, #tpu.memory_space<semaphore_mem>>)
      %c9_i32_131 = arith.constant 9 : i32
      %188 = arith.addi %115, %c9_i32_131 : i32
      %189 = arith.index_cast %188 : i32 to index
      %190 = memref.load %arg1[%189] : memref<16xi32, #tpu.memory_space<smem>>
      %c9_i32_132 = arith.constant 9 : i32
      %c0_i32_133 = arith.constant 0 : i32
      %191 = tpu.memref_slice %arg2[%190, %c0_i32_133] : memref<64x128xf32, #tpu.memory_space<any>> -> memref<1x128xf32, #tpu.memory_space<any>>
      %c9_i32_134 = arith.constant 9 : i32
      %c0_i32_135 = arith.constant 0 : i32
      %192 = tpu.memref_slice %arg4[%114, %c9_i32_134, %c0_i32_135] : memref<2x16x128xf32, #tpu.memory_space<vmem>> -> memref<1x1x128xf32, #tpu.memory_space<vmem>>
      %193 = tpu.memref_squeeze %192 : memref<1x1x128xf32, #tpu.memory_space<vmem>> -> memref<1x128xf32, #tpu.memory_space<vmem>>
      %194 = tpu.memref_slice %arg5[%114, %c9_i32_132] : memref<2x16x!tpu.dma_semaphore, #tpu.memory_space<semaphore_mem>> -> memref<1x1x!tpu.dma_semaphore, #tpu.memory_space<semaphore_mem>>
      %195 = tpu.memref_squeeze %194 : memref<1x1x!tpu.dma_semaphore, #tpu.memory_space<semaphore_mem>> -> memref<!tpu.dma_semaphore, #tpu.memory_space<semaphore_mem>>
      tpu.enqueue_dma source(%191 : memref<1x128xf32, #tpu.memory_space<any>>) target(%193 : memref<1x128xf32, #tpu.memory_space<vmem>>) target_semaphore(%195 : memref<!tpu.dma_semaphore, #tpu.memory_space<semaphore_mem>>)
      %c10_i32_136 = arith.constant 10 : i32
      %196 = arith.addi %115, %c10_i32_136 : i32
      %197 = arith.index_cast %196 : i32 to index
      %198 = memref.load %arg1[%197] : memref<16xi32, #tpu.memory_space<smem>>
      %c10_i32_137 = arith.constant 10 : i32
      %c0_i32_138 = arith.constant 0 : i32
      %199 = tpu.memref_slice %arg2[%198, %c0_i32_138] : memref<64x128xf32, #tpu.memory_space<any>> -> memref<1x128xf32, #tpu.memory_space<any>>
      %c10_i32_139 = arith.constant 10 : i32
      %c0_i32_140 = arith.constant 0 : i32
      %200 = tpu.memref_slice %arg4[%114, %c10_i32_139, %c0_i32_140] : memref<2x16x128xf32, #tpu.memory_space<vmem>> -> memref<1x1x128xf32, #tpu.memory_space<vmem>>
      %201 = tpu.memref_squeeze %200 : memref<1x1x128xf32, #tpu.memory_space<vmem>> -> memref<1x128xf32, #tpu.memory_space<vmem>>
      %202 = tpu.memref_slice %arg5[%114, %c10_i32_137] : memref<2x16x!tpu.dma_semaphore, #tpu.memory_space<semaphore_mem>> -> memref<1x1x!tpu.dma_semaphore, #tpu.memory_space<semaphore_mem>>
      %203 = tpu.memref_squeeze %202 : memref<1x1x!tpu.dma_semaphore, #tpu.memory_space<semaphore_mem>> -> memref<!tpu.dma_semaphore, #tpu.memory_space<semaphore_mem>>
      tpu.enqueue_dma source(%199 : memref<1x128xf32, #tpu.memory_space<any>>) target(%201 : memref<1x128xf32, #tpu.memory_space<vmem>>) target_semaphore(%203 : memref<!tpu.dma_semaphore, #tpu.memory_space<semaphore_mem>>)
      %c11_i32_141 = arith.constant 11 : i32
      %204 = arith.addi %115, %c11_i32_141 : i32
      %205 = arith.index_cast %204 : i32 to index
      %206 = memref.load %arg1[%205] : memref<16xi32, #tpu.memory_space<smem>>
      %c11_i32_142 = arith.constant 11 : i32
      %c0_i32_143 = arith.constant 0 : i32
      %207 = tpu.memref_slice %arg2[%206, %c0_i32_143] : memref<64x128xf32, #tpu.memory_space<any>> -> memref<1x128xf32, #tpu.memory_space<any>>
      %c11_i32_144 = arith.constant 11 : i32
      %c0_i32_145 = arith.constant 0 : i32
      %208 = tpu.memref_slice %arg4[%114, %c11_i32_144, %c0_i32_145] : memref<2x16x128xf32, #tpu.memory_space<vmem>> -> memref<1x1x128xf32, #tpu.memory_space<vmem>>
      %209 = tpu.memref_squeeze %208 : memref<1x1x128xf32, #tpu.memory_space<vmem>> -> memref<1x128xf32, #tpu.memory_space<vmem>>
      %210 = tpu.memref_slice %arg5[%114, %c11_i32_142] : memref<2x16x!tpu.dma_semaphore, #tpu.memory_space<semaphore_mem>> -> memref<1x1x!tpu.dma_semaphore, #tpu.memory_space<semaphore_mem>>
      %211 = tpu.memref_squeeze %210 : memref<1x1x!tpu.dma_semaphore, #tpu.memory_space<semaphore_mem>> -> memref<!tpu.dma_semaphore, #tpu.memory_space<semaphore_mem>>
      tpu.enqueue_dma source(%207 : memref<1x128xf32, #tpu.memory_space<any>>) target(%209 : memref<1x128xf32, #tpu.memory_space<vmem>>) target_semaphore(%211 : memref<!tpu.dma_semaphore, #tpu.memory_space<semaphore_mem>>)
      %c12_i32_146 = arith.constant 12 : i32
      %212 = arith.addi %115, %c12_i32_146 : i32
      %213 = arith.index_cast %212 : i32 to index
      %214 = memref.load %arg1[%213] : memref<16xi32, #tpu.memory_space<smem>>
      %c12_i32_147 = arith.constant 12 : i32
      %c0_i32_148 = arith.constant 0 : i32
      %215 = tpu.memref_slice %arg2[%214, %c0_i32_148] : memref<64x128xf32, #tpu.memory_space<any>> -> memref<1x128xf32, #tpu.memory_space<any>>
      %c12_i32_149 = arith.constant 12 : i32
      %c0_i32_150 = arith.constant 0 : i32
      %216 = tpu.memref_slice %arg4[%114, %c12_i32_149, %c0_i32_150] : memref<2x16x128xf32, #tpu.memory_space<vmem>> -> memref<1x1x128xf32, #tpu.memory_space<vmem>>
      %217 = tpu.memref_squeeze %216 : memref<1x1x128xf32, #tpu.memory_space<vmem>> -> memref<1x128xf32, #tpu.memory_space<vmem>>
      %218 = tpu.memref_slice %arg5[%114, %c12_i32_147] : memref<2x16x!tpu.dma_semaphore, #tpu.memory_space<semaphore_mem>> -> memref<1x1x!tpu.dma_semaphore, #tpu.memory_space<semaphore_mem>>
      %219 = tpu.memref_squeeze %218 : memref<1x1x!tpu.dma_semaphore, #tpu.memory_space<semaphore_mem>> -> memref<!tpu.dma_semaphore, #tpu.memory_space<semaphore_mem>>
      tpu.enqueue_dma source(%215 : memref<1x128xf32, #tpu.memory_space<any>>) target(%217 : memref<1x128xf32, #tpu.memory_space<vmem>>) target_semaphore(%219 : memref<!tpu.dma_semaphore, #tpu.memory_space<semaphore_mem>>)
      %c13_i32_151 = arith.constant 13 : i32
      %220 = arith.addi %115, %c13_i32_151 : i32
      %221 = arith.index_cast %220 : i32 to index
      %222 = memref.load %arg1[%221] : memref<16xi32, #tpu.memory_space<smem>>
      %c13_i32_152 = arith.constant 13 : i32
      %c0_i32_153 = arith.constant 0 : i32
      %223 = tpu.memref_slice %arg2[%222, %c0_i32_153] : memref<64x128xf32, #tpu.memory_space<any>> -> memref<1x128xf32, #tpu.memory_space<any>>
      %c13_i32_154 = arith.constant 13 : i32
      %c0_i32_155 = arith.constant 0 : i32
      %224 = tpu.memref_slice %arg4[%114, %c13_i32_154, %c0_i32_155] : memref<2x16x128xf32, #tpu.memory_space<vmem>> -> memref<1x1x128xf32, #tpu.memory_space<vmem>>
      %225 = tpu.memref_squeeze %224 : memref<1x1x128xf32, #tpu.memory_space<vmem>> -> memref<1x128xf32, #tpu.memory_space<vmem>>
      %226 = tpu.memref_slice %arg5[%114, %c13_i32_152] : memref<2x16x!tpu.dma_semaphore, #tpu.memory_space<semaphore_mem>> -> memref<1x1x!tpu.dma_semaphore, #tpu.memory_space<semaphore_mem>>
      %227 = tpu.memref_squeeze %226 : memref<1x1x!tpu.dma_semaphore, #tpu.memory_space<semaphore_mem>> -> memref<!tpu.dma_semaphore, #tpu.memory_space<semaphore_mem>>
      tpu.enqueue_dma source(%223 : memref<1x128xf32, #tpu.memory_space<any>>) target(%225 : memref<1x128xf32, #tpu.memory_space<vmem>>) target_semaphore(%227 : memref<!tpu.dma_semaphore, #tpu.memory_space<semaphore_mem>>)
      %c14_i32_156 = arith.constant 14 : i32
      %228 = arith.addi %115, %c14_i32_156 : i32
      %229 = arith.index_cast %228 : i32 to index
      %230 = memref.load %arg1[%229] : memref<16xi32, #tpu.memory_space<smem>>
      %c14_i32_157 = arith.constant 14 : i32
      %c0_i32_158 = arith.constant 0 : i32
      %231 = tpu.memref_slice %arg2[%230, %c0_i32_158] : memref<64x128xf32, #tpu.memory_space<any>> -> memref<1x128xf32, #tpu.memory_space<any>>
      %c14_i32_159 = arith.constant 14 : i32
      %c0_i32_160 = arith.constant 0 : i32
      %232 = tpu.memref_slice %arg4[%114, %c14_i32_159, %c0_i32_160] : memref<2x16x128xf32, #tpu.memory_space<vmem>> -> memref<1x1x128xf32, #tpu.memory_space<vmem>>
      %233 = tpu.memref_squeeze %232 : memref<1x1x128xf32, #tpu.memory_space<vmem>> -> memref<1x128xf32, #tpu.memory_space<vmem>>
      %234 = tpu.memref_slice %arg5[%114, %c14_i32_157] : memref<2x16x!tpu.dma_semaphore, #tpu.memory_space<semaphore_mem>> -> memref<1x1x!tpu.dma_semaphore, #tpu.memory_space<semaphore_mem>>
      %235 = tpu.memref_squeeze %234 : memref<1x1x!tpu.dma_semaphore, #tpu.memory_space<semaphore_mem>> -> memref<!tpu.dma_semaphore, #tpu.memory_space<semaphore_mem>>
      tpu.enqueue_dma source(%231 : memref<1x128xf32, #tpu.memory_space<any>>) target(%233 : memref<1x128xf32, #tpu.memory_space<vmem>>) target_semaphore(%235 : memref<!tpu.dma_semaphore, #tpu.memory_space<semaphore_mem>>)
      %c15_i32_161 = arith.constant 15 : i32
      %236 = arith.addi %115, %c15_i32_161 : i32
      %237 = arith.index_cast %236 : i32 to index
      %238 = memref.load %arg1[%237] : memref<16xi32, #tpu.memory_space<smem>>
      %c15_i32_162 = arith.constant 15 : i32
      %c0_i32_163 = arith.constant 0 : i32
      %239 = tpu.memref_slice %arg2[%238, %c0_i32_163] : memref<64x128xf32, #tpu.memory_space<any>> -> memref<1x128xf32, #tpu.memory_space<any>>
      %c15_i32_164 = arith.constant 15 : i32
      %c0_i32_165 = arith.constant 0 : i32
      %240 = tpu.memref_slice %arg4[%114, %c15_i32_164, %c0_i32_165] : memref<2x16x128xf32, #tpu.memory_space<vmem>> -> memref<1x1x128xf32, #tpu.memory_space<vmem>>
      %241 = tpu.memref_squeeze %240 : memref<1x1x128xf32, #tpu.memory_space<vmem>> -> memref<1x128xf32, #tpu.memory_space<vmem>>
      %242 = tpu.memref_slice %arg5[%114, %c15_i32_162] : memref<2x16x!tpu.dma_semaphore, #tpu.memory_space<semaphore_mem>> -> memref<1x1x!tpu.dma_semaphore, #tpu.memory_space<semaphore_mem>>
      %243 = tpu.memref_squeeze %242 : memref<1x1x!tpu.dma_semaphore, #tpu.memory_space<semaphore_mem>> -> memref<!tpu.dma_semaphore, #tpu.memory_space<semaphore_mem>>
      tpu.enqueue_dma source(%239 : memref<1x128xf32, #tpu.memory_space<any>>) target(%241 : memref<1x128xf32, #tpu.memory_space<vmem>>) target_semaphore(%243 : memref<!tpu.dma_semaphore, #tpu.memory_space<semaphore_mem>>)
    } else {
    }
    %c2_i32 = arith.constant 2 : i32
    %c0_i32_3 = arith.constant 0 : i32
    %7 = arith.cmpi eq, %c2_i32, %c0_i32_3 : i32
    %c1_i32_4 = arith.constant 1 : i32
    %8 = arith.select %7, %c1_i32_4, %c2_i32 : i32
    %9 = arith.remsi %arg0, %8 : i32
    %c0_i32_5 = arith.constant 0 : i32
    %10 = arith.cmpi ne, %9, %c0_i32_5 : i32
    %c0_i32_6 = arith.constant 0 : i32
    %11 = arith.cmpi slt, %9, %c0_i32_6 : i32
    %c0_i32_7 = arith.constant 0 : i32
    %12 = arith.cmpi slt, %8, %c0_i32_7 : i32
    %13 = arith.xori %11, %12 : i1
    %14 = arith.andi %13, %10 : i1
    %15 = arith.addi %9, %8 : i32
    %16 = arith.select %14, %15, %9 : i32
    %c0_i32_8 = arith.constant 0 : i32
    %c0_i32_9 = arith.constant 0 : i32
    %c0_i32_10 = arith.constant 0 : i32
    %17 = tpu.memref_slice %arg2[%c0_i32_9, %c0_i32_10] : memref<64x128xf32, #tpu.memory_space<any>> -> memref<1x128xf32, #tpu.memory_space<any>>
    %c0_i32_11 = arith.constant 0 : i32
    %c0_i32_12 = arith.constant 0 : i32
    %18 = tpu.memref_slice %arg4[%16, %c0_i32_11, %c0_i32_12] : memref<2x16x128xf32, #tpu.memory_space<vmem>> -> memref<1x1x128xf32, #tpu.memory_space<vmem>>
    %19 = tpu.memref_squeeze %18 : memref<1x1x128xf32, #tpu.memory_space<vmem>> -> memref<1x128xf32, #tpu.memory_space<vmem>>
    %20 = tpu.memref_slice %arg5[%16, %c0_i32_8] : memref<2x16x!tpu.dma_semaphore, #tpu.memory_space<semaphore_mem>> -> memref<1x1x!tpu.dma_semaphore, #tpu.memory_space<semaphore_mem>>
    %21 = tpu.memref_squeeze %20 : memref<1x1x!tpu.dma_semaphore, #tpu.memory_space<semaphore_mem>> -> memref<!tpu.dma_semaphore, #tpu.memory_space<semaphore_mem>>
    tpu.wait_dma2 semaphore(%21 : memref<!tpu.dma_semaphore, #tpu.memory_space<semaphore_mem>>) src(%17 : memref<1x128xf32, #tpu.memory_space<any>>) dst(%19 : memref<1x128xf32, #tpu.memory_space<vmem>>)
    %c1_i32_13 = arith.constant 1 : i32
    %c0_i32_14 = arith.constant 0 : i32
    %c0_i32_15 = arith.constant 0 : i32
    %22 = tpu.memref_slice %arg2[%c0_i32_14, %c0_i32_15] : memref<64x128xf32, #tpu.memory_space<any>> -> memref<1x128xf32, #tpu.memory_space<any>>
    %c1_i32_16 = arith.constant 1 : i32
    %c0_i32_17 = arith.constant 0 : i32
    %23 = tpu.memref_slice %arg4[%16, %c1_i32_16, %c0_i32_17] : memref<2x16x128xf32, #tpu.memory_space<vmem>> -> memref<1x1x128xf32, #tpu.memory_space<vmem>>
    %24 = tpu.memref_squeeze %23 : memref<1x1x128xf32, #tpu.memory_space<vmem>> -> memref<1x128xf32, #tpu.memory_space<vmem>>
    %25 = tpu.memref_slice %arg5[%16, %c1_i32_13] : memref<2x16x!tpu.dma_semaphore, #tpu.memory_space<semaphore_mem>> -> memref<1x1x!tpu.dma_semaphore, #tpu.memory_space<semaphore_mem>>
    %26 = tpu.memref_squeeze %25 : memref<1x1x!tpu.dma_semaphore, #tpu.memory_space<semaphore_mem>> -> memref<!tpu.dma_semaphore, #tpu.memory_space<semaphore_mem>>
    tpu.wait_dma2 semaphore(%26 : memref<!tpu.dma_semaphore, #tpu.memory_space<semaphore_mem>>) src(%22 : memref<1x128xf32, #tpu.memory_space<any>>) dst(%24 : memref<1x128xf32, #tpu.memory_space<vmem>>)
    %c2_i32_18 = arith.constant 2 : i32
    %c0_i32_19 = arith.constant 0 : i32
    %c0_i32_20 = arith.constant 0 : i32
    %27 = tpu.memref_slice %arg2[%c0_i32_19, %c0_i32_20] : memref<64x128xf32, #tpu.memory_space<any>> -> memref<1x128xf32, #tpu.memory_space<any>>
    %c2_i32_21 = arith.constant 2 : i32
    %c0_i32_22 = arith.constant 0 : i32
    %28 = tpu.memref_slice %arg4[%16, %c2_i32_21, %c0_i32_22] : memref<2x16x128xf32, #tpu.memory_space<vmem>> -> memref<1x1x128xf32, #tpu.memory_space<vmem>>
    %29 = tpu.memref_squeeze %28 : memref<1x1x128xf32, #tpu.memory_space<vmem>> -> memref<1x128xf32, #tpu.memory_space<vmem>>
    %30 = tpu.memref_slice %arg5[%16, %c2_i32_18] : memref<2x16x!tpu.dma_semaphore, #tpu.memory_space<semaphore_mem>> -> memref<1x1x!tpu.dma_semaphore, #tpu.memory_space<semaphore_mem>>
    %31 = tpu.memref_squeeze %30 : memref<1x1x!tpu.dma_semaphore, #tpu.memory_space<semaphore_mem>> -> memref<!tpu.dma_semaphore, #tpu.memory_space<semaphore_mem>>
    tpu.wait_dma2 semaphore(%31 : memref<!tpu.dma_semaphore, #tpu.memory_space<semaphore_mem>>) src(%27 : memref<1x128xf32, #tpu.memory_space<any>>) dst(%29 : memref<1x128xf32, #tpu.memory_space<vmem>>)
    %c3_i32 = arith.constant 3 : i32
    %c0_i32_23 = arith.constant 0 : i32
    %c0_i32_24 = arith.constant 0 : i32
    %32 = tpu.memref_slice %arg2[%c0_i32_23, %c0_i32_24] : memref<64x128xf32, #tpu.memory_space<any>> -> memref<1x128xf32, #tpu.memory_space<any>>
    %c3_i32_25 = arith.constant 3 : i32
    %c0_i32_26 = arith.constant 0 : i32
    %33 = tpu.memref_slice %arg4[%16, %c3_i32_25, %c0_i32_26] : memref<2x16x128xf32, #tpu.memory_space<vmem>> -> memref<1x1x128xf32, #tpu.memory_space<vmem>>
    %34 = tpu.memref_squeeze %33 : memref<1x1x128xf32, #tpu.memory_space<vmem>> -> memref<1x128xf32, #tpu.memory_space<vmem>>
    %35 = tpu.memref_slice %arg5[%16, %c3_i32] : memref<2x16x!tpu.dma_semaphore, #tpu.memory_space<semaphore_mem>> -> memref<1x1x!tpu.dma_semaphore, #tpu.memory_space<semaphore_mem>>
    %36 = tpu.memref_squeeze %35 : memref<1x1x!tpu.dma_semaphore, #tpu.memory_space<semaphore_mem>> -> memref<!tpu.dma_semaphore, #tpu.memory_space<semaphore_mem>>
    tpu.wait_dma2 semaphore(%36 : memref<!tpu.dma_semaphore, #tpu.memory_space<semaphore_mem>>) src(%32 : memref<1x128xf32, #tpu.memory_space<any>>) dst(%34 : memref<1x128xf32, #tpu.memory_space<vmem>>)
    %c4_i32 = arith.constant 4 : i32
    %c0_i32_27 = arith.constant 0 : i32
    %c0_i32_28 = arith.constant 0 : i32
    %37 = tpu.memref_slice %arg2[%c0_i32_27, %c0_i32_28] : memref<64x128xf32, #tpu.memory_space<any>> -> memref<1x128xf32, #tpu.memory_space<any>>
    %c4_i32_29 = arith.constant 4 : i32
    %c0_i32_30 = arith.constant 0 : i32
    %38 = tpu.memref_slice %arg4[%16, %c4_i32_29, %c0_i32_30] : memref<2x16x128xf32, #tpu.memory_space<vmem>> -> memref<1x1x128xf32, #tpu.memory_space<vmem>>
    %39 = tpu.memref_squeeze %38 : memref<1x1x128xf32, #tpu.memory_space<vmem>> -> memref<1x128xf32, #tpu.memory_space<vmem>>
    %40 = tpu.memref_slice %arg5[%16, %c4_i32] : memref<2x16x!tpu.dma_semaphore, #tpu.memory_space<semaphore_mem>> -> memref<1x1x!tpu.dma_semaphore, #tpu.memory_space<semaphore_mem>>
    %41 = tpu.memref_squeeze %40 : memref<1x1x!tpu.dma_semaphore, #tpu.memory_space<semaphore_mem>> -> memref<!tpu.dma_semaphore, #tpu.memory_space<semaphore_mem>>
    tpu.wait_dma2 semaphore(%41 : memref<!tpu.dma_semaphore, #tpu.memory_space<semaphore_mem>>) src(%37 : memref<1x128xf32, #tpu.memory_space<any>>) dst(%39 : memref<1x128xf32, #tpu.memory_space<vmem>>)
    %c5_i32 = arith.constant 5 : i32
    %c0_i32_31 = arith.constant 0 : i32
    %c0_i32_32 = arith.constant 0 : i32
    %42 = tpu.memref_slice %arg2[%c0_i32_31, %c0_i32_32] : memref<64x128xf32, #tpu.memory_space<any>> -> memref<1x128xf32, #tpu.memory_space<any>>
    %c5_i32_33 = arith.constant 5 : i32
    %c0_i32_34 = arith.constant 0 : i32
    %43 = tpu.memref_slice %arg4[%16, %c5_i32_33, %c0_i32_34] : memref<2x16x128xf32, #tpu.memory_space<vmem>> -> memref<1x1x128xf32, #tpu.memory_space<vmem>>
    %44 = tpu.memref_squeeze %43 : memref<1x1x128xf32, #tpu.memory_space<vmem>> -> memref<1x128xf32, #tpu.memory_space<vmem>>
    %45 = tpu.memref_slice %arg5[%16, %c5_i32] : memref<2x16x!tpu.dma_semaphore, #tpu.memory_space<semaphore_mem>> -> memref<1x1x!tpu.dma_semaphore, #tpu.memory_space<semaphore_mem>>
    %46 = tpu.memref_squeeze %45 : memref<1x1x!tpu.dma_semaphore, #tpu.memory_space<semaphore_mem>> -> memref<!tpu.dma_semaphore, #tpu.memory_space<semaphore_mem>>
    tpu.wait_dma2 semaphore(%46 : memref<!tpu.dma_semaphore, #tpu.memory_space<semaphore_mem>>) src(%42 : memref<1x128xf32, #tpu.memory_space<any>>) dst(%44 : memref<1x128xf32, #tpu.memory_space<vmem>>)
    %c6_i32 = arith.constant 6 : i32
    %c0_i32_35 = arith.constant 0 : i32
    %c0_i32_36 = arith.constant 0 : i32
    %47 = tpu.memref_slice %arg2[%c0_i32_35, %c0_i32_36] : memref<64x128xf32, #tpu.memory_space<any>> -> memref<1x128xf32, #tpu.memory_space<any>>
    %c6_i32_37 = arith.constant 6 : i32
    %c0_i32_38 = arith.constant 0 : i32
    %48 = tpu.memref_slice %arg4[%16, %c6_i32_37, %c0_i32_38] : memref<2x16x128xf32, #tpu.memory_space<vmem>> -> memref<1x1x128xf32, #tpu.memory_space<vmem>>
    %49 = tpu.memref_squeeze %48 : memref<1x1x128xf32, #tpu.memory_space<vmem>> -> memref<1x128xf32, #tpu.memory_space<vmem>>
    %50 = tpu.memref_slice %arg5[%16, %c6_i32] : memref<2x16x!tpu.dma_semaphore, #tpu.memory_space<semaphore_mem>> -> memref<1x1x!tpu.dma_semaphore, #tpu.memory_space<semaphore_mem>>
    %51 = tpu.memref_squeeze %50 : memref<1x1x!tpu.dma_semaphore, #tpu.memory_space<semaphore_mem>> -> memref<!tpu.dma_semaphore, #tpu.memory_space<semaphore_mem>>
    tpu.wait_dma2 semaphore(%51 : memref<!tpu.dma_semaphore, #tpu.memory_space<semaphore_mem>>) src(%47 : memref<1x128xf32, #tpu.memory_space<any>>) dst(%49 : memref<1x128xf32, #tpu.memory_space<vmem>>)
    %c7_i32 = arith.constant 7 : i32
    %c0_i32_39 = arith.constant 0 : i32
    %c0_i32_40 = arith.constant 0 : i32
    %52 = tpu.memref_slice %arg2[%c0_i32_39, %c0_i32_40] : memref<64x128xf32, #tpu.memory_space<any>> -> memref<1x128xf32, #tpu.memory_space<any>>
    %c7_i32_41 = arith.constant 7 : i32
    %c0_i32_42 = arith.constant 0 : i32
    %53 = tpu.memref_slice %arg4[%16, %c7_i32_41, %c0_i32_42] : memref<2x16x128xf32, #tpu.memory_space<vmem>> -> memref<1x1x128xf32, #tpu.memory_space<vmem>>
    %54 = tpu.memref_squeeze %53 : memref<1x1x128xf32, #tpu.memory_space<vmem>> -> memref<1x128xf32, #tpu.memory_space<vmem>>
    %55 = tpu.memref_slice %arg5[%16, %c7_i32] : memref<2x16x!tpu.dma_semaphore, #tpu.memory_space<semaphore_mem>> -> memref<1x1x!tpu.dma_semaphore, #tpu.memory_space<semaphore_mem>>
    %56 = tpu.memref_squeeze %55 : memref<1x1x!tpu.dma_semaphore, #tpu.memory_space<semaphore_mem>> -> memref<!tpu.dma_semaphore, #tpu.memory_space<semaphore_mem>>
    tpu.wait_dma2 semaphore(%56 : memref<!tpu.dma_semaphore, #tpu.memory_space<semaphore_mem>>) src(%52 : memref<1x128xf32, #tpu.memory_space<any>>) dst(%54 : memref<1x128xf32, #tpu.memory_space<vmem>>)
    %c8_i32 = arith.constant 8 : i32
    %c0_i32_43 = arith.constant 0 : i32
    %c0_i32_44 = arith.constant 0 : i32
    %57 = tpu.memref_slice %arg2[%c0_i32_43, %c0_i32_44] : memref<64x128xf32, #tpu.memory_space<any>> -> memref<1x128xf32, #tpu.memory_space<any>>
    %c8_i32_45 = arith.constant 8 : i32
    %c0_i32_46 = arith.constant 0 : i32
    %58 = tpu.memref_slice %arg4[%16, %c8_i32_45, %c0_i32_46] : memref<2x16x128xf32, #tpu.memory_space<vmem>> -> memref<1x1x128xf32, #tpu.memory_space<vmem>>
    %59 = tpu.memref_squeeze %58 : memref<1x1x128xf32, #tpu.memory_space<vmem>> -> memref<1x128xf32, #tpu.memory_space<vmem>>
    %60 = tpu.memref_slice %arg5[%16, %c8_i32] : memref<2x16x!tpu.dma_semaphore, #tpu.memory_space<semaphore_mem>> -> memref<1x1x!tpu.dma_semaphore, #tpu.memory_space<semaphore_mem>>
    %61 = tpu.memref_squeeze %60 : memref<1x1x!tpu.dma_semaphore, #tpu.memory_space<semaphore_mem>> -> memref<!tpu.dma_semaphore, #tpu.memory_space<semaphore_mem>>
    tpu.wait_dma2 semaphore(%61 : memref<!tpu.dma_semaphore, #tpu.memory_space<semaphore_mem>>) src(%57 : memref<1x128xf32, #tpu.memory_space<any>>) dst(%59 : memref<1x128xf32, #tpu.memory_space<vmem>>)
    %c9_i32 = arith.constant 9 : i32
    %c0_i32_47 = arith.constant 0 : i32
    %c0_i32_48 = arith.constant 0 : i32
    %62 = tpu.memref_slice %arg2[%c0_i32_47, %c0_i32_48] : memref<64x128xf32, #tpu.memory_space<any>> -> memref<1x128xf32, #tpu.memory_space<any>>
    %c9_i32_49 = arith.constant 9 : i32
    %c0_i32_50 = arith.constant 0 : i32
    %63 = tpu.memref_slice %arg4[%16, %c9_i32_49, %c0_i32_50] : memref<2x16x128xf32, #tpu.memory_space<vmem>> -> memref<1x1x128xf32, #tpu.memory_space<vmem>>
    %64 = tpu.memref_squeeze %63 : memref<1x1x128xf32, #tpu.memory_space<vmem>> -> memref<1x128xf32, #tpu.memory_space<vmem>>
    %65 = tpu.memref_slice %arg5[%16, %c9_i32] : memref<2x16x!tpu.dma_semaphore, #tpu.memory_space<semaphore_mem>> -> memref<1x1x!tpu.dma_semaphore, #tpu.memory_space<semaphore_mem>>
    %66 = tpu.memref_squeeze %65 : memref<1x1x!tpu.dma_semaphore, #tpu.memory_space<semaphore_mem>> -> memref<!tpu.dma_semaphore, #tpu.memory_space<semaphore_mem>>
    tpu.wait_dma2 semaphore(%66 : memref<!tpu.dma_semaphore, #tpu.memory_space<semaphore_mem>>) src(%62 : memref<1x128xf32, #tpu.memory_space<any>>) dst(%64 : memref<1x128xf32, #tpu.memory_space<vmem>>)
    %c10_i32 = arith.constant 10 : i32
    %c0_i32_51 = arith.constant 0 : i32
    %c0_i32_52 = arith.constant 0 : i32
    %67 = tpu.memref_slice %arg2[%c0_i32_51, %c0_i32_52] : memref<64x128xf32, #tpu.memory_space<any>> -> memref<1x128xf32, #tpu.memory_space<any>>
    %c10_i32_53 = arith.constant 10 : i32
    %c0_i32_54 = arith.constant 0 : i32
    %68 = tpu.memref_slice %arg4[%16, %c10_i32_53, %c0_i32_54] : memref<2x16x128xf32, #tpu.memory_space<vmem>> -> memref<1x1x128xf32, #tpu.memory_space<vmem>>
    %69 = tpu.memref_squeeze %68 : memref<1x1x128xf32, #tpu.memory_space<vmem>> -> memref<1x128xf32, #tpu.memory_space<vmem>>
    %70 = tpu.memref_slice %arg5[%16, %c10_i32] : memref<2x16x!tpu.dma_semaphore, #tpu.memory_space<semaphore_mem>> -> memref<1x1x!tpu.dma_semaphore, #tpu.memory_space<semaphore_mem>>
    %71 = tpu.memref_squeeze %70 : memref<1x1x!tpu.dma_semaphore, #tpu.memory_space<semaphore_mem>> -> memref<!tpu.dma_semaphore, #tpu.memory_space<semaphore_mem>>
    tpu.wait_dma2 semaphore(%71 : memref<!tpu.dma_semaphore, #tpu.memory_space<semaphore_mem>>) src(%67 : memref<1x128xf32, #tpu.memory_space<any>>) dst(%69 : memref<1x128xf32, #tpu.memory_space<vmem>>)
    %c11_i32 = arith.constant 11 : i32
    %c0_i32_55 = arith.constant 0 : i32
    %c0_i32_56 = arith.constant 0 : i32
    %72 = tpu.memref_slice %arg2[%c0_i32_55, %c0_i32_56] : memref<64x128xf32, #tpu.memory_space<any>> -> memref<1x128xf32, #tpu.memory_space<any>>
    %c11_i32_57 = arith.constant 11 : i32
    %c0_i32_58 = arith.constant 0 : i32
    %73 = tpu.memref_slice %arg4[%16, %c11_i32_57, %c0_i32_58] : memref<2x16x128xf32, #tpu.memory_space<vmem>> -> memref<1x1x128xf32, #tpu.memory_space<vmem>>
    %74 = tpu.memref_squeeze %73 : memref<1x1x128xf32, #tpu.memory_space<vmem>> -> memref<1x128xf32, #tpu.memory_space<vmem>>
    %75 = tpu.memref_slice %arg5[%16, %c11_i32] : memref<2x16x!tpu.dma_semaphore, #tpu.memory_space<semaphore_mem>> -> memref<1x1x!tpu.dma_semaphore, #tpu.memory_space<semaphore_mem>>
    %76 = tpu.memref_squeeze %75 : memref<1x1x!tpu.dma_semaphore, #tpu.memory_space<semaphore_mem>> -> memref<!tpu.dma_semaphore, #tpu.memory_space<semaphore_mem>>
    tpu.wait_dma2 semaphore(%76 : memref<!tpu.dma_semaphore, #tpu.memory_space<semaphore_mem>>) src(%72 : memref<1x128xf32, #tpu.memory_space<any>>) dst(%74 : memref<1x128xf32, #tpu.memory_space<vmem>>)
    %c12_i32 = arith.constant 12 : i32
    %c0_i32_59 = arith.constant 0 : i32
    %c0_i32_60 = arith.constant 0 : i32
    %77 = tpu.memref_slice %arg2[%c0_i32_59, %c0_i32_60] : memref<64x128xf32, #tpu.memory_space<any>> -> memref<1x128xf32, #tpu.memory_space<any>>
    %c12_i32_61 = arith.constant 12 : i32
    %c0_i32_62 = arith.constant 0 : i32
    %78 = tpu.memref_slice %arg4[%16, %c12_i32_61, %c0_i32_62] : memref<2x16x128xf32, #tpu.memory_space<vmem>> -> memref<1x1x128xf32, #tpu.memory_space<vmem>>
    %79 = tpu.memref_squeeze %78 : memref<1x1x128xf32, #tpu.memory_space<vmem>> -> memref<1x128xf32, #tpu.memory_space<vmem>>
    %80 = tpu.memref_slice %arg5[%16, %c12_i32] : memref<2x16x!tpu.dma_semaphore, #tpu.memory_space<semaphore_mem>> -> memref<1x1x!tpu.dma_semaphore, #tpu.memory_space<semaphore_mem>>
    %81 = tpu.memref_squeeze %80 : memref<1x1x!tpu.dma_semaphore, #tpu.memory_space<semaphore_mem>> -> memref<!tpu.dma_semaphore, #tpu.memory_space<semaphore_mem>>
    tpu.wait_dma2 semaphore(%81 : memref<!tpu.dma_semaphore, #tpu.memory_space<semaphore_mem>>) src(%77 : memref<1x128xf32, #tpu.memory_space<any>>) dst(%79 : memref<1x128xf32, #tpu.memory_space<vmem>>)
    %c13_i32 = arith.constant 13 : i32
    %c0_i32_63 = arith.constant 0 : i32
    %c0_i32_64 = arith.constant 0 : i32
    %82 = tpu.memref_slice %arg2[%c0_i32_63, %c0_i32_64] : memref<64x128xf32, #tpu.memory_space<any>> -> memref<1x128xf32, #tpu.memory_space<any>>
    %c13_i32_65 = arith.constant 13 : i32
    %c0_i32_66 = arith.constant 0 : i32
    %83 = tpu.memref_slice %arg4[%16, %c13_i32_65, %c0_i32_66] : memref<2x16x128xf32, #tpu.memory_space<vmem>> -> memref<1x1x128xf32, #tpu.memory_space<vmem>>
    %84 = tpu.memref_squeeze %83 : memref<1x1x128xf32, #tpu.memory_space<vmem>> -> memref<1x128xf32, #tpu.memory_space<vmem>>
    %85 = tpu.memref_slice %arg5[%16, %c13_i32] : memref<2x16x!tpu.dma_semaphore, #tpu.memory_space<semaphore_mem>> -> memref<1x1x!tpu.dma_semaphore, #tpu.memory_space<semaphore_mem>>
    %86 = tpu.memref_squeeze %85 : memref<1x1x!tpu.dma_semaphore, #tpu.memory_space<semaphore_mem>> -> memref<!tpu.dma_semaphore, #tpu.memory_space<semaphore_mem>>
    tpu.wait_dma2 semaphore(%86 : memref<!tpu.dma_semaphore, #tpu.memory_space<semaphore_mem>>) src(%82 : memref<1x128xf32, #tpu.memory_space<any>>) dst(%84 : memref<1x128xf32, #tpu.memory_space<vmem>>)
    %c14_i32 = arith.constant 14 : i32
    %c0_i32_67 = arith.constant 0 : i32
    %c0_i32_68 = arith.constant 0 : i32
    %87 = tpu.memref_slice %arg2[%c0_i32_67, %c0_i32_68] : memref<64x128xf32, #tpu.memory_space<any>> -> memref<1x128xf32, #tpu.memory_space<any>>
    %c14_i32_69 = arith.constant 14 : i32
    %c0_i32_70 = arith.constant 0 : i32
    %88 = tpu.memref_slice %arg4[%16, %c14_i32_69, %c0_i32_70] : memref<2x16x128xf32, #tpu.memory_space<vmem>> -> memref<1x1x128xf32, #tpu.memory_space<vmem>>
    %89 = tpu.memref_squeeze %88 : memref<1x1x128xf32, #tpu.memory_space<vmem>> -> memref<1x128xf32, #tpu.memory_space<vmem>>
    %90 = tpu.memref_slice %arg5[%16, %c14_i32] : memref<2x16x!tpu.dma_semaphore, #tpu.memory_space<semaphore_mem>> -> memref<1x1x!tpu.dma_semaphore, #tpu.memory_space<semaphore_mem>>
    %91 = tpu.memref_squeeze %90 : memref<1x1x!tpu.dma_semaphore, #tpu.memory_space<semaphore_mem>> -> memref<!tpu.dma_semaphore, #tpu.memory_space<semaphore_mem>>
    tpu.wait_dma2 semaphore(%91 : memref<!tpu.dma_semaphore, #tpu.memory_space<semaphore_mem>>) src(%87 : memref<1x128xf32, #tpu.memory_space<any>>) dst(%89 : memref<1x128xf32, #tpu.memory_space<vmem>>)
    %c15_i32 = arith.constant 15 : i32
    %c0_i32_71 = arith.constant 0 : i32
    %c0_i32_72 = arith.constant 0 : i32
    %92 = tpu.memref_slice %arg2[%c0_i32_71, %c0_i32_72] : memref<64x128xf32, #tpu.memory_space<any>> -> memref<1x128xf32, #tpu.memory_space<any>>
    %c15_i32_73 = arith.constant 15 : i32
    %c0_i32_74 = arith.constant 0 : i32
    %93 = tpu.memref_slice %arg4[%16, %c15_i32_73, %c0_i32_74] : memref<2x16x128xf32, #tpu.memory_space<vmem>> -> memref<1x1x128xf32, #tpu.memory_space<vmem>>
    %94 = tpu.memref_squeeze %93 : memref<1x1x128xf32, #tpu.memory_space<vmem>> -> memref<1x128xf32, #tpu.memory_space<vmem>>
    %95 = tpu.memref_slice %arg5[%16, %c15_i32] : memref<2x16x!tpu.dma_semaphore, #tpu.memory_space<semaphore_mem>> -> memref<1x1x!tpu.dma_semaphore, #tpu.memory_space<semaphore_mem>>
    %96 = tpu.memref_squeeze %95 : memref<1x1x!tpu.dma_semaphore, #tpu.memory_space<semaphore_mem>> -> memref<!tpu.dma_semaphore, #tpu.memory_space<semaphore_mem>>
    tpu.wait_dma2 semaphore(%96 : memref<!tpu.dma_semaphore, #tpu.memory_space<semaphore_mem>>) src(%92 : memref<1x128xf32, #tpu.memory_space<any>>) dst(%94 : memref<1x128xf32, #tpu.memory_space<vmem>>)
    %97 = arith.index_cast %16 : i32 to index
    %c0 = arith.constant 0 : index
    %c0_75 = arith.constant 0 : index
    %98 = vector.load %arg4[%97, %c0, %c0_75] : memref<2x16x128xf32, #tpu.memory_space<vmem>>, vector<1x16x128xf32>
    %99 = vector.shape_cast %98 : vector<1x16x128xf32> to vector<16x128xf32>
    %cst = arith.constant 5.65685415 : f32
    %100 = vector.broadcast %cst : f32 to vector<16x128xf32>
    %101 = arith.mulf %99, %100 : vector<16x128xf32>
    %c0_76 = arith.constant 0 : index
    %c0_77 = arith.constant 0 : index
    %102 = vector.load %arg3[%c0_76, %c0_77] : memref<16x128xf32, #tpu.memory_space<vmem>>, vector<16x128xf32>
    tpu.vector_store %arg3[%c0_76, %c0_77], %101 {strides = array<i32>} : memref<16x128xf32, #tpu.memory_space<vmem>>, vector<16x128xf32>,
    return
  }
  func.func @transform_1(%arg0: i32, %arg1: memref<16xi32, #tpu.memory_space<smem>>) -> (i32, i32) {
    %c0_i32 = arith.constant 0 : i32
    %c0_i32_0 = arith.constant 0 : i32
    return %arg0, %c0_i32 : i32, i32
  }
}

</mosaic_0001>

<bundles_post_ra>
// kernel: tpu_custom_call.1
= control target key start
LH: loop header
LB: loop body
LE: loop exit
PB: predicated region body
PF: predicated region fallthrough
CT: control target
= control target key end

     0   :  { %s1632_s9 = smov [#allocation5]   ;;  %s1912_s0 = inlined_call_operand.hbm [shape: s32[16], index: 0, kind: input, shape index: {}]   ;;  %s1913_s1 = inlined_call_operand.hbm [shape: f32[64,128], index: 1, kind: input, shape index: {}]   ;;  %s1914_s2 = inlined_call_operand.hbm [shape: f32[16,128], index: 2, kind: output, shape index: {}]  }
   0x1   :  { %8 = dma.hbm_to_smem %s1912_s0, 16, %s1632_s9, [#allocation4] }
   0x2   :  { %1596 = dma.done.wait [#allocation4], 16 }
   0x3   :  { %1597 = vsyncadd [#allocation4], 4294967280 }
   0x4   :  { %10 = sfence }
   0x5   :  { %11 = vsyncpa [#allocation7], 0  ;;  %s16_s12 = sld [smem:[#allocation5]]  ;;  %s1633_s13 = smov [#allocation2]  }
   0x6   :  { %s26_s14 = sshll.u32 %s1633_s13, 4  ;;  %s1670_s15 = sld [smem:[#allocation5 + $0x1]]  ;;  %s1672_s14 = int_to_ptr.vmem [resolvable:$true] %s26_s14 }
   0x7   :  { %s1634_s16 = smov [#allocation2 + $0x1]   ;;  %s1674_s18 = sld [smem:[#allocation5 + $0x2]] }
   0x8   :  { %s42_s17 = sshll.u32 %s1634_s16, 4  ;;  %s1635_s19 = smov [#allocation2 + $0x2]   ;;  %s1676_s17 = int_to_ptr.vmem [resolvable:$true] %s42_s17 }
   0x9   :  { %s58_s0 = sshll.u32 %s1635_s19, 4  ;;  %s1678_s20 = sld [smem:[#allocation5 + $0x3]]  ;;  %s1680_s0 = int_to_ptr.vmem [resolvable:$true] %s58_s0 }
   0xa   :  { %s1689_s29 = scalar_lea.hbm %s1913_s1, 1024 }
   0xb   :  { %s1101_s21 = sshll.u32 %s16_s12, 4 }
   0xc   :  { %s18_s24 = scalar_lea.hbm %s1913_s1, %s1101_s21  ;;  %s1103_s25 = sshll.u32 %s1670_s15, 4 }
   0xd   :  { %s1224_s26 = scalar_lea.hbm %s18_s24, 16  ;;  %p1227_p1 = scmp.lt.s32.totalorder %s18_s24, %s1913_s1 }
   0xe   :  { %p1225_p0 = scmp.ne.s32.totalorder %s18_s24, %s1224_s26  ;;  %p1228_p2 = scmp.lt.s32.totalorder %s1689_s29, %s1224_s26 }
  0x10   :  { %p1229_p3 = por %p1228_p2, %p1227_p1 }
  0x12   :  { %p1230_p4 = pnand %p1229_p3, %p1225_p0 }
  0x14   :  { %1233 = shalt.err (!%p1230_p4)  }
  0x15   :  { %s1234_s4 = scalar_lea.vmem %s1672_s14, 16  ;;  %s1698_s5 = scalar_lea.vmem %s1672_s14, 512 }
  0x16   :  { %p1235_p5 = scmp.ne.s32.totalorder %s1672_s14, %s1234_s4  ;;  %p1239_p6 = scmp.lt.s32.totalorder %s1672_s14, %s1672_s14 }
  0x17   :  { %p1240_p7 = scmp.lt.s32.totalorder %s1698_s5, %s1234_s4 }
  0x19   :  { %p1241_p8 = por %p1240_p7, %p1239_p6 }
  0x1b   :  { %p1242_p9 = pnand %p1241_p8, %p1235_p5 }
  0x1d   :  { %1245 = shalt.err (!%p1242_p9)  }
  0x1e   :  { %29 = dma.hbm_to_vmem [thread:$0]  %s18_s24, 16, %s1672_s14, [#allocation3] }
  0x1f   :  { %s32_s8 = scalar_lea.hbm %s1913_s1, %s1103_s25  ;;  %s1105_s9 = sshll.u32 %s1674_s18, 4 }
  0x20   :  { %s1246_s10 = scalar_lea.hbm %s32_s8, 16  ;;  %p1249_p11 = scmp.lt.s32.totalorder %s32_s8, %s1913_s1 }
  0x21   :  { %p1247_p10 = scmp.ne.s32.totalorder %s32_s8, %s1246_s10  ;;  %p1250_p12 = scmp.lt.s32.totalorder %s1689_s29, %s1246_s10 }
  0x23   :  { %p1251_p13 = por %p1250_p12, %p1249_p11 }
  0x25   :  { %p1252_p0 = pnand %p1251_p13, %p1247_p10 }
  0x27   :  { %1255 = shalt.err (!%p1252_p0)  }
  0x28   :  { %s1256_s13 = scalar_lea.vmem %s1676_s17, 16  ;;  %p1261_p2 = scmp.lt.s32.totalorder %s1676_s17, %s1672_s14 }
  0x29   :  { %p1257_p1 = scmp.ne.s32.totalorder %s1676_s17, %s1256_s13  ;;  %p1262_p3 = scmp.lt.s32.totalorder %s1698_s5, %s1256_s13 }
  0x2b   :  { %p1263_p4 = por %p1262_p3, %p1261_p2 }
  0x2d   :  { %p1264_p5 = pnand %p1263_p4, %p1257_p1 }
  0x2f   :  { %1267 = shalt.err (!%p1264_p5)  }
  0x30   :  { %45 = dma.hbm_to_vmem [thread:$0]  %s32_s8, 16, %s1676_s17, [#allocation3 + $0x1] }
  0x31   :  { %s48_s18 = scalar_lea.hbm %s1913_s1, %s1105_s9  ;;  %s1107_s19 = sshll.u32 %s1678_s20, 4 }
  0x32   :  { %s1268_s21 = scalar_lea.hbm %s48_s18, 16  ;;  %p1271_p7 = scmp.lt.s32.totalorder %s48_s18, %s1913_s1 }
  0x33   :  { %p1269_p6 = scmp.ne.s32.totalorder %s48_s18, %s1268_s21  ;;  %p1272_p8 = scmp.lt.s32.totalorder %s1689_s29, %s1268_s21 }
  0x35   :  { %p1273_p9 = por %p1272_p8, %p1271_p7 }
  0x37   :  { %p1274_p10 = pnand %p1273_p9, %p1269_p6 }
  0x39   :  { %1277 = shalt.err (!%p1274_p10)  }
  0x3a   :  { %s1278_s17 = scalar_lea.vmem %s1680_s0, 16  ;;  %p1283_p12 = scmp.lt.s32.totalorder %s1680_s0, %s1672_s14 }
  0x3b   :  { %p1279_p11 = scmp.ne.s32.totalorder %s1680_s0, %s1278_s17  ;;  %p1284_p13 = scmp.lt.s32.totalorder %s1698_s5, %s1278_s17 }
  0x3d   :  { %p1285_p0 = por %p1284_p13, %p1283_p12 }
  0x3f   :  { %p1286_p1 = pnand %p1285_p0, %p1279_p11 }
  0x41   :  { %1289 = shalt.err (!%p1286_p1)  }
  0x42   :  { %61 = dma.hbm_to_vmem [thread:$0]  %s48_s18, 16, %s1680_s0, [#allocation3 + $0x2] }
  0x43   :  { %s64_s25 = scalar_lea.hbm %s1913_s1, %s1107_s19  ;;  %s1636_s26 = smov [#allocation2 + $0x3]  }
  0x44   :  { %s74_s27 = sshll.u32 %s1636_s26, 4  ;;  %s1108_s28 = sld [smem:[#allocation5 + $0x4]]  ;;  %s75_s27 = int_to_ptr.vmem [resolvable:$true] %s74_s27 }
  0x45   :  { %s1290_s30 = scalar_lea.hbm %s64_s25, 16  ;;  %p1293_p3 = scmp.lt.s32.totalorder %s64_s25, %s1913_s1 }
  0x46   :  { %p1291_p2 = scmp.ne.s32.totalorder %s64_s25, %s1290_s30  ;;  %p1294_p4 = scmp.lt.s32.totalorder %s1689_s29, %s1290_s30 }
  0x48   :  { %p1295_p5 = por %p1294_p4, %p1293_p3 }
  0x4a   :  { %p1296_p6 = pnand %p1295_p5, %p1291_p2 }
  0x4c   :  { %1299 = shalt.err (!%p1296_p6)  }
  0x4d   :  { %s1300_s6 = scalar_lea.vmem %s75_s27, 16  ;;  %p1305_p8 = scmp.lt.s32.totalorder %s75_s27, %s1672_s14 }
  0x4e   :  { %p1301_p7 = scmp.ne.s32.totalorder %s75_s27, %s1300_s6  ;;  %p1306_p9 = scmp.lt.s32.totalorder %s1698_s5, %s1300_s6 }
  0x50   :  { %p1307_p10 = por %p1306_p9, %p1305_p8 }
  0x52   :  { %p1308_p11 = pnand %p1307_p10, %p1301_p7 }
  0x54   :  { %1311 = shalt.err (!%p1308_p11)  }
  0x55   :  { %77 = dma.hbm_to_vmem [thread:$0]  %s64_s25, 16, %s75_s27, [#allocation3 + $0x3] }
  0x56   :  { %s1637_s0 = smov [#allocation2 + $0x4]   ;;  %s1110_s8 = sld [smem:[#allocation5 + $0x5]] }
  0x57   :  { %s90_s7 = sshll.u32 %s1637_s0, 4  ;;  %s1638_s9 = smov [#allocation2 + $0x5]   ;;  %s91_s7 = int_to_ptr.vmem [resolvable:$true] %s90_s7 }
  0x58   :  { %s106_s10 = sshll.u32 %s1638_s9, 4  ;;  %s1741_s11 = sld [smem:[#allocation5 + $0x6]]  ;;  %s1743_s10 = int_to_ptr.vmem [resolvable:$true] %s106_s10 }
  0x59   :  { %s1109_s12 = sshll.u32 %s1108_s28, 4 }
  0x5a   :  { %s80_s16 = scalar_lea.hbm %s1913_s1, %s1109_s12 }
  0x5b   :  { %s1312_s18 = scalar_lea.hbm %s80_s16, 16  ;;  %p1315_p13 = scmp.lt.s32.totalorder %s80_s16, %s1913_s1 }
  0x5c   :  { %p1313_p12 = scmp.ne.s32.totalorder %s80_s16, %s1312_s18  ;;  %p1316_p0 = scmp.lt.s32.totalorder %s1689_s29, %s1312_s18 }
  0x5e   :  { %p1317_p1 = por %p1316_p0, %p1315_p13 }
  0x60   :  { %p1318_p2 = pnand %p1317_p1, %p1313_p12 }
  0x62   :  { %1321 = shalt.err (!%p1318_p2)  }
  0x63   :  { %s1322_s22 = scalar_lea.vmem %s91_s7, 16  ;;  %p1327_p4 = scmp.lt.s32.totalorder %s91_s7, %s1672_s14 }
  0x64   :  { %p1323_p3 = scmp.ne.s32.totalorder %s91_s7, %s1322_s22  ;;  %p1328_p5 = scmp.lt.s32.totalorder %s1698_s5, %s1322_s22 }
  0x66   :  { %p1329_p6 = por %p1328_p5, %p1327_p4 }
  0x68   :  { %p1330_p7 = pnand %p1329_p6, %p1323_p3 }
  0x6a   :  { %1333 = shalt.err (!%p1330_p7)  }
  0x6b   :  { %93 = dma.hbm_to_vmem [thread:$0]  %s80_s16, 16, %s91_s7, [#allocation3 + $0x4] }
  0x6c   :  { %s1111_s23 = sshll.u32 %s1110_s8, 4  ;;  %s1639_s17 = smov [#allocation2 + $0x6]  }
  0x6d   :  { %s122_s20 = sshll.u32 %s1639_s17, 4  ;;  %s96_s26 = scalar_lea.hbm %s1913_s1, %s1111_s23  ;;  %s1757_s20 = int_to_ptr.vmem [resolvable:$true] %s122_s20 }
  0x6e   :  { %s1334_s27 = scalar_lea.hbm %s96_s26, 16  ;;  %p1337_p9 = scmp.lt.s32.totalorder %s96_s26, %s1913_s1 }
  0x6f   :  { %p1335_p8 = scmp.ne.s32.totalorder %s96_s26, %s1334_s27  ;;  %p1338_p10 = scmp.lt.s32.totalorder %s1689_s29, %s1334_s27 }
  0x71   :  { %p1339_p11 = por %p1338_p10, %p1337_p9 }
  0x73   :  { %p1340_p12 = pnand %p1339_p11, %p1335_p8 }
  0x75   :  { %1343 = shalt.err (!%p1340_p12)  }
  0x76   :  { %s1344_s3 = scalar_lea.vmem %s1743_s10, 16  ;;  %p1349_p0 = scmp.lt.s32.totalorder %s1743_s10, %s1672_s14 }
  0x77   :  { %p1345_p13 = scmp.ne.s32.totalorder %s1743_s10, %s1344_s3  ;;  %p1350_p1 = scmp.lt.s32.totalorder %s1698_s5, %s1344_s3 }
  0x79   :  { %p1351_p2 = por %p1350_p1, %p1349_p0 }
  0x7b   :  { %p1352_p3 = pnand %p1351_p2, %p1345_p13 }
  0x7d   :  { %1355 = shalt.err (!%p1352_p3)  }
  0x7e   :  { %109 = dma.hbm_to_vmem [thread:$0]  %s96_s26, 16, %s1743_s10, [#allocation3 + $0x5] }
  0x7f   :  { %s1113_s4 = sshll.u32 %s1741_s11, 4  ;;  %s1114_s6 = sld [smem:[#allocation5 + $0x7]] }
  0x80   :  { %s112_s8 = scalar_lea.hbm %s1913_s1, %s1113_s4 }
  0x81   :  { %s1356_s9 = scalar_lea.hbm %s112_s8, 16  ;;  %p1359_p5 = scmp.lt.s32.totalorder %s112_s8, %s1913_s1 }
  0x82   :  { %p1357_p4 = scmp.ne.s32.totalorder %s112_s8, %s1356_s9  ;;  %p1360_p6 = scmp.lt.s32.totalorder %s1689_s29, %s1356_s9 }
  0x84   :  { %p1361_p7 = por %p1360_p6, %p1359_p5 }
  0x86   :  { %p1362_p8 = pnand %p1361_p7, %p1357_p4 }
  0x88   :  { %1365 = shalt.err (!%p1362_p8)  }
  0x89   :  { %s1366_s10 = scalar_lea.vmem %s1757_s20, 16  ;;  %p1371_p10 = scmp.lt.s32.totalorder %s1757_s20, %s1672_s14 }
  0x8a   :  { %p1367_p9 = scmp.ne.s32.totalorder %s1757_s20, %s1366_s10  ;;  %p1372_p11 = scmp.lt.s32.totalorder %s1698_s5, %s1366_s10 }
  0x8c   :  { %p1373_p12 = por %p1372_p11, %p1371_p10 }
  0x8e   :  { %p1374_p13 = pnand %p1373_p12, %p1367_p9 }
  0x90   :  { %1377 = shalt.err (!%p1374_p13)  }
  0x91   :  { %125 = dma.hbm_to_vmem [thread:$0]  %s112_s8, 16, %s1757_s20, [#allocation3 + $0x6] }
  0x92   :  { %s1640_s11 = smov [#allocation2 + $0x7]   ;;  %s1116_s16 = sld [smem:[#allocation5 + $0x8]] }
  0x93   :  { %s138_s15 = sshll.u32 %s1640_s11, 4  ;;  %s1641_s18 = smov [#allocation2 + $0x8]   ;;  %s139_s15 = int_to_ptr.vmem [resolvable:$true] %s138_s15 }
  0x94   :  { %s154_s19 = sshll.u32 %s1641_s18, 4  ;;  %s1783_s21 = sld [smem:[#allocation5 + $0x9]]  ;;  %s1785_s19 = int_to_ptr.vmem [resolvable:$true] %s154_s19 }
  0x95   :  { %s1115_s22 = sshll.u32 %s1114_s6, 4 }
  0x96   :  { %s128_s24 = scalar_lea.hbm %s1913_s1, %s1115_s22 }
  0x97   :  { %s1378_s25 = scalar_lea.hbm %s128_s24, 16  ;;  %p1381_p1 = scmp.lt.s32.totalorder %s128_s24, %s1913_s1 }
  0x98   :  { %p1379_p0 = scmp.ne.s32.totalorder %s128_s24, %s1378_s25  ;;  %p1382_p2 = scmp.lt.s32.totalorder %s1689_s29, %s1378_s25 }
  0x9a   :  { %p1383_p3 = por %p1382_p2, %p1381_p1 }
  0x9c   :  { %p1384_p4 = pnand %p1383_p3, %p1379_p0 }
  0x9e   :  { %1387 = shalt.err (!%p1384_p4)  }
  0x9f   :  { %s1388_s20 = scalar_lea.vmem %s139_s15, 16  ;;  %p1393_p6 = scmp.lt.s32.totalorder %s139_s15, %s1672_s14 }
  0xa0   :  { %p1389_p5 = scmp.ne.s32.totalorder %s139_s15, %s1388_s20  ;;  %p1394_p7 = scmp.lt.s32.totalorder %s1698_s5, %s1388_s20 }
  0xa2   :  { %p1395_p8 = por %p1394_p7, %p1393_p6 }
  0xa4   :  { %p1396_p9 = pnand %p1395_p8, %p1389_p5 }
  0xa6   :  { %1399 = shalt.err (!%p1396_p9)  }
  0xa7   :  { %141 = dma.hbm_to_vmem [thread:$0]  %s128_s24, 16, %s139_s15, [#allocation3 + $0x7] }
  0xa8   :  { %s1117_s28 = sshll.u32 %s1116_s16, 4  ;;  %s1642_s30 = smov [#allocation2 + $0x9]  }
  0xa9   :  { %s170_s3 = sshll.u32 %s1642_s30, 4  ;;  %s144_s0 = scalar_lea.hbm %s1913_s1, %s1117_s28  ;;  %s1799_s3 = int_to_ptr.vmem [resolvable:$true] %s170_s3 }
  0xaa   :  { %s1400_s7 = scalar_lea.hbm %s144_s0, 16  ;;  %p1403_p11 = scmp.lt.s32.totalorder %s144_s0, %s1913_s1 }
  0xab   :  { %p1401_p10 = scmp.ne.s32.totalorder %s144_s0, %s1400_s7  ;;  %p1404_p12 = scmp.lt.s32.totalorder %s1689_s29, %s1400_s7 }
  0xad   :  { %p1405_p13 = por %p1404_p12, %p1403_p11 }
  0xaf   :  { %p1406_p0 = pnand %p1405_p13, %p1401_p10 }
  0xb1   :  { %1409 = shalt.err (!%p1406_p0)  }
  0xb2   :  { %s1410_s12 = scalar_lea.vmem %s1785_s19, 16  ;;  %p1415_p2 = scmp.lt.s32.totalorder %s1785_s19, %s1672_s14 }
  0xb3   :  { %p1411_p1 = scmp.ne.s32.totalorder %s1785_s19, %s1410_s12  ;;  %p1416_p3 = scmp.lt.s32.totalorder %s1698_s5, %s1410_s12 }
  0xb5   :  { %p1417_p4 = por %p1416_p3, %p1415_p2 }
  0xb7   :  { %p1418_p5 = pnand %p1417_p4, %p1411_p1 }
  0xb9   :  { %1421 = shalt.err (!%p1418_p5)  }
  0xba   :  { %157 = dma.hbm_to_vmem [thread:$0]  %s144_s0, 16, %s1785_s19, [#allocation3 + $0x8] }
  0xbb   :  { %s1119_s13 = sshll.u32 %s1783_s21, 4  ;;  %s1120_s10 = sld [smem:[#allocation5 + $0xa]] }
  0xbc   :  { %s160_s16 = scalar_lea.hbm %s1913_s1, %s1119_s13 }
  0xbd   :  { %s1422_s18 = scalar_lea.hbm %s160_s16, 16  ;;  %p1425_p7 = scmp.lt.s32.totalorder %s160_s16, %s1913_s1 }
  0xbe   :  { %p1423_p6 = scmp.ne.s32.totalorder %s160_s16, %s1422_s18  ;;  %p1426_p8 = scmp.lt.s32.totalorder %s1689_s29, %s1422_s18 }
  0xc0   :  { %p1427_p9 = por %p1426_p8, %p1425_p7 }
  0xc2   :  { %p1428_p10 = pnand %p1427_p9, %p1423_p6 }
  0xc4   :  { %1431 = shalt.err (!%p1428_p10)  }
  0xc5   :  { %s1432_s19 = scalar_lea.vmem %s1799_s3, 16  ;;  %p1437_p12 = scmp.lt.s32.totalorder %s1799_s3, %s1672_s14 }
  0xc6   :  { %p1433_p11 = scmp.ne.s32.totalorder %s1799_s3, %s1432_s19  ;;  %p1438_p13 = scmp.lt.s32.totalorder %s1698_s5, %s1432_s19 }
  0xc8   :  { %p1439_p0 = por %p1438_p13, %p1437_p12 }
  0xca   :  { %p1440_p1 = pnand %p1439_p0, %p1433_p11 }
  0xcc   :  { %1443 = shalt.err (!%p1440_p1)  }
  0xcd   :  { %173 = dma.hbm_to_vmem [thread:$0]  %s160_s16, 16, %s1799_s3, [#allocation3 + $0x9] }
  0xce   :  { %s1643_s21 = smov [#allocation2 + $0xa]   ;;  %s1122_s24 = sld [smem:[#allocation5 + $0xb]] }
  0xcf   :  { %s186_s17 = sshll.u32 %s1643_s21, 4  ;;  %s1644_s25 = smov [#allocation2 + $0xb]   ;;  %s187_s17 = int_to_ptr.vmem [resolvable:$true] %s186_s17 }
  0xd0   :  { %s202_s26 = sshll.u32 %s1644_s25, 4  ;;  %s1825_s27 = sld [smem:[#allocation5 + $0xc]]  ;;  %s1827_s26 = int_to_ptr.vmem [resolvable:$true] %s202_s26 }
  0xd1   :  { %s1121_s20 = sshll.u32 %s1120_s10, 4 }
  0xd2   :  { %s176_s4 = scalar_lea.hbm %s1913_s1, %s1121_s20 }
  0xd3   :  { %s1444_s6 = scalar_lea.hbm %s176_s4, 16  ;;  %p1447_p3 = scmp.lt.s32.totalorder %s176_s4, %s1913_s1 }
  0xd4   :  { %p1445_p2 = scmp.ne.s32.totalorder %s176_s4, %s1444_s6  ;;  %p1448_p4 = scmp.lt.s32.totalorder %s1689_s29, %s1444_s6 }
  0xd6   :  { %p1449_p5 = por %p1448_p4, %p1447_p3 }
  0xd8   :  { %p1450_p6 = pnand %p1449_p5, %p1445_p2 }
  0xda   :  { %1453 = shalt.err (!%p1450_p6)  }
  0xdb   :  { %s1454_s3 = scalar_lea.vmem %s187_s17, 16  ;;  %p1459_p8 = scmp.lt.s32.totalorder %s187_s17, %s1672_s14 }
  0xdc   :  { %p1455_p7 = scmp.ne.s32.totalorder %s187_s17, %s1454_s3  ;;  %p1460_p9 = scmp.lt.s32.totalorder %s1698_s5, %s1454_s3 }
  0xde   :  { %p1461_p10 = por %p1460_p9, %p1459_p8 }
  0xe0   :  { %p1462_p11 = pnand %p1461_p10, %p1455_p7 }
  0xe2   :  { %1465 = shalt.err (!%p1462_p11)  }
  0xe3   :  { %189 = dma.hbm_to_vmem [thread:$0]  %s176_s4, 16, %s187_s17, [#allocation3 + $0xa] }
  0xe4   :  { %s1123_s8 = sshll.u32 %s1122_s24, 4  ;;  %s1645_s9 = smov [#allocation2 + $0xc]  }
  0xe5   :  { %s218_s12 = sshll.u32 %s1645_s9, 4  ;;  %s192_s11 = scalar_lea.hbm %s1913_s1, %s1123_s8  ;;  %s1841_s12 = int_to_ptr.vmem [resolvable:$true] %s218_s12 }
  0xe6   :  { %s1466_s15 = scalar_lea.hbm %s192_s11, 16  ;;  %p1469_p13 = scmp.lt.s32.totalorder %s192_s11, %s1913_s1 }
  0xe7   :  { %p1467_p12 = scmp.ne.s32.totalorder %s192_s11, %s1466_s15  ;;  %p1470_p0 = scmp.lt.s32.totalorder %s1689_s29, %s1466_s15 }
  0xe9   :  { %p1471_p1 = por %p1470_p0, %p1469_p13 }
  0xeb   :  { %p1472_p2 = pnand %p1471_p1, %p1467_p12 }
  0xed   :  { %1475 = shalt.err (!%p1472_p2)  }
  0xee   :  { %s1476_s22 = scalar_lea.vmem %s1827_s26, 16  ;;  %p1481_p4 = scmp.lt.s32.totalorder %s1827_s26, %s1672_s14 }
  0xef   :  { %p1477_p3 = scmp.ne.s32.totalorder %s1827_s26, %s1476_s22  ;;  %p1482_p5 = scmp.lt.s32.totalorder %s1698_s5, %s1476_s22 }
  0xf1   :  { %p1483_p6 = por %p1482_p5, %p1481_p4 }
  0xf3   :  { %p1484_p7 = pnand %p1483_p6, %p1477_p3 }
  0xf5   :  { %1487 = shalt.err (!%p1484_p7)  }
  0xf6   :  { %205 = dma.hbm_to_vmem [thread:$0]  %s192_s11, 16, %s1827_s26, [#allocation3 + $0xb] }
  0xf7   :  { %s1125_s23 = sshll.u32 %s1825_s27, 4  ;;  %s1126_s19 = sld [smem:[#allocation5 + $0xd]] }
  0xf8   :  { %s208_s24 = scalar_lea.hbm %s1913_s1, %s1125_s23 }
  0xf9   :  { %s1488_s25 = scalar_lea.hbm %s208_s24, 16  ;;  %p1491_p9 = scmp.lt.s32.totalorder %s208_s24, %s1913_s1 }
  0xfa   :  { %p1489_p8 = scmp.ne.s32.totalorder %s208_s24, %s1488_s25  ;;  %p1492_p10 = scmp.lt.s32.totalorder %s1689_s29, %s1488_s25 }
  0xfc   :  { %p1493_p11 = por %p1492_p10, %p1491_p9 }
  0xfe   :  { %p1494_p12 = pnand %p1493_p11, %p1489_p8 }
 0x100   :  { %1497 = shalt.err (!%p1494_p12)  }
 0x101   :  { %s1498_s26 = scalar_lea.vmem %s1841_s12, 16  ;;  %p1503_p0 = scmp.lt.s32.totalorder %s1841_s12, %s1672_s14 }
 0x102   :  { %p1499_p13 = scmp.ne.s32.totalorder %s1841_s12, %s1498_s26  ;;  %p1504_p1 = scmp.lt.s32.totalorder %s1698_s5, %s1498_s26 }
 0x104   :  { %p1505_p2 = por %p1504_p1, %p1503_p0 }
 0x106   :  { %p1506_p3 = pnand %p1505_p2, %p1499_p13 }
 0x108   :  { %1509 = shalt.err (!%p1506_p3)  }
 0x109   :  { %221 = dma.hbm_to_vmem [thread:$0]  %s208_s24, 16, %s1841_s12, [#allocation3 + $0xc] }
 0x10a   :  { %s1646_s27 = smov [#allocation2 + $0xd]   ;;  %s1128_s4 = sld [smem:[#allocation5 + $0xe]] }
 0x10b   :  { %s234_s30 = sshll.u32 %s1646_s27, 4  ;;  %s1647_s6 = smov [#allocation2 + $0xe]   ;;  %s235_s30 = int_to_ptr.vmem [resolvable:$true] %s234_s30 }
 0x10c   :  { %s250_s0 = sshll.u32 %s1647_s6, 4  ;;  %s1867_s7 = sld [smem:[#allocation5 + $0xf]]  ;;  %s1869_s0 = int_to_ptr.vmem [resolvable:$true] %s250_s0 }
 0x10d   :  { %s1127_s3 = sshll.u32 %s1126_s19, 4 }
 0x10e   :  { %s224_s13 = scalar_lea.hbm %s1913_s1, %s1127_s3 }
 0x10f   :  { %s1510_s10 = scalar_lea.hbm %s224_s13, 16  ;;  %p1513_p5 = scmp.lt.s32.totalorder %s224_s13, %s1913_s1 }
 0x110   :  { %p1511_p4 = scmp.ne.s32.totalorder %s224_s13, %s1510_s10  ;;  %p1514_p6 = scmp.lt.s32.totalorder %s1689_s29, %s1510_s10 }
 0x112   :  { %p1515_p7 = por %p1514_p6, %p1513_p5 }
 0x114   :  { %p1516_p8 = pnand %p1515_p7, %p1511_p4 }
 0x116   :  { %1519 = shalt.err (!%p1516_p8)  }
 0x117   :  { %s1520_s12 = scalar_lea.vmem %s235_s30, 16  ;;  %p1525_p10 = scmp.lt.s32.totalorder %s235_s30, %s1672_s14 }
 0x118   :  { %p1521_p9 = scmp.ne.s32.totalorder %s235_s30, %s1520_s12  ;;  %p1526_p11 = scmp.lt.s32.totalorder %s1698_s5, %s1520_s12 }
 0x11a   :  { %p1527_p12 = por %p1526_p11, %p1525_p10 }
 0x11c   :  { %p1528_p13 = pnand %p1527_p12, %p1521_p9 }
 0x11e   :  { %1531 = shalt.err (!%p1528_p13)  }
 0x11f   :  { %237 = dma.hbm_to_vmem [thread:$0]  %s224_s13, 16, %s235_s30, [#allocation3 + $0xd] }
 0x120   :  { %s1129_s16 = sshll.u32 %s1128_s4, 4  ;;  %s1648_s18 = smov [#allocation2 + $0xf]  }
 0x121   :  { %s266_s22 = sshll.u32 %s1648_s18, 4  ;;  %s240_s21 = scalar_lea.hbm %s1913_s1, %s1129_s16  ;;  %s1883_s22 = int_to_ptr.vmem [resolvable:$true] %s266_s22 }
 0x122   :  { %s1532_s17 = scalar_lea.hbm %s240_s21, 16  ;;  %p1535_p1 = scmp.lt.s32.totalorder %s240_s21, %s1913_s1 }
 0x123   :  { %p1533_p0 = scmp.ne.s32.totalorder %s240_s21, %s1532_s17  ;;  %p1536_p2 = scmp.lt.s32.totalorder %s1689_s29, %s1532_s17 }
 0x125   :  { %p1537_p3 = por %p1536_p2, %p1535_p1 }
 0x127   :  { %p1538_p4 = pnand %p1537_p3, %p1533_p0 }
 0x129   :  { %1541 = shalt.err (!%p1538_p4)  }
 0x12a   :  { %s1542_s20 = scalar_lea.vmem %s1869_s0, 16  ;;  %p1547_p6 = scmp.lt.s32.totalorder %s1869_s0, %s1672_s14 }
 0x12b   :  { %p1543_p5 = scmp.ne.s32.totalorder %s1869_s0, %s1542_s20  ;;  %p1548_p7 = scmp.lt.s32.totalorder %s1698_s5, %s1542_s20 }
 0x12d   :  { %p1549_p8 = por %p1548_p7, %p1547_p6 }
 0x12f   :  { %p1550_p9 = pnand %p1549_p8, %p1543_p5 }
 0x131   :  { %1553 = shalt.err (!%p1550_p9)  }
 0x132   :  { %253 = dma.hbm_to_vmem [thread:$0]  %s240_s21, 16, %s1869_s0, [#allocation3 + $0xe] }
 0x133   :  { %s1131_s28 = sshll.u32 %s1867_s7, 4 }
 0x134   :  { %s256_s30 = scalar_lea.hbm %s1913_s1, %s1131_s28 }
 0x135   :  { %s1554_s4 = scalar_lea.hbm %s256_s30, 16  ;;  %p1557_p11 = scmp.lt.s32.totalorder %s256_s30, %s1913_s1 }
 0x136   :  { %p1555_p10 = scmp.ne.s32.totalorder %s256_s30, %s1554_s4  ;;  %p1558_p12 = scmp.lt.s32.totalorder %s1689_s29, %s1554_s4 }
 0x138   :  { %p1559_p13 = por %p1558_p12, %p1557_p11 }
 0x13a   :  { %p1560_p0 = pnand %p1559_p13, %p1555_p10 }
 0x13c   :  { %1563 = shalt.err (!%p1560_p0)  }
 0x13d   :  { %s1564_s0 = scalar_lea.vmem %s1883_s22, 16  ;;  %p1569_p2 = scmp.lt.s32.totalorder %s1883_s22, %s1672_s14 }
 0x13e   :  { %p1565_p1 = scmp.ne.s32.totalorder %s1883_s22, %s1564_s0  ;;  %p1570_p3 = scmp.lt.s32.totalorder %s1698_s5, %s1564_s0 }
 0x140   :  { %p1571_p4 = por %p1570_p3, %p1569_p2 }
 0x142   :  { %p1572_p5 = pnand %p1571_p4, %p1565_p1 }
 0x144   :  { %1575 = shalt.err (!%p1572_p5)  }
 0x145   :  { %269 = dma.hbm_to_vmem [thread:$0]  %s256_s30, 16, %s1883_s22, [#allocation3 + $0xf] }
 0x146   :  { %1598 = dma.done.wait [#allocation3], 16 }
 0x147   :  { %1599 = vsyncadd [#allocation3], 4294967280 }
 0x148   :  { %1600 = dma.done.wait [#allocation3 + $0x1], 16 }
 0x149   :  { %1601 = vsyncadd [#allocation3 + $0x1], 4294967280 }
 0x14a   :  { %1602 = dma.done.wait [#allocation3 + $0x2], 16 }
 0x14b   :  { %1603 = vsyncadd [#allocation3 + $0x2], 4294967280 }
 0x14c   :  { %1604 = dma.done.wait [#allocation3 + $0x3], 16 }
 0x14d   :  { %1605 = vsyncadd [#allocation3 + $0x3], 4294967280 }
 0x14e   :  { %1606 = dma.done.wait [#allocation3 + $0x4], 16 }
 0x14f   :  { %1607 = vsyncadd [#allocation3 + $0x4], 4294967280 }
 0x150   :  { %1608 = dma.done.wait [#allocation3 + $0x5], 16 }
 0x151   :  { %1609 = vsyncadd [#allocation3 + $0x5], 4294967280 }
 0x152   :  { %1610 = dma.done.wait [#allocation3 + $0x6], 16 }
 0x153   :  { %1611 = vsyncadd [#allocation3 + $0x6], 4294967280 }
 0x154   :  { %1612 = dma.done.wait [#allocation3 + $0x7], 16 }
 0x155   :  { %1613 = vsyncadd [#allocation3 + $0x7], 4294967280 }
 0x156   :  { %1614 = dma.done.wait [#allocation3 + $0x8], 16 }
 0x157   :  { %1615 = vsyncadd [#allocation3 + $0x8], 4294967280 }
 0x158   :  { %1616 = dma.done.wait [#allocation3 + $0x9], 16 }
 0x159   :  { %1617 = vsyncadd [#allocation3 + $0x9], 4294967280 }
 0x15a   :  { %1618 = dma.done.wait [#allocation3 + $0xa], 16 }
 0x15b   :  { %1619 = vsyncadd [#allocation3 + $0xa], 4294967280 }
 0x15c   :  { %1620 = dma.done.wait [#allocation3 + $0xb], 16 }
 0x15d   :  { %1621 = vsyncadd [#allocation3 + $0xb], 4294967280 }
 0x15e   :  { %1622 = dma.done.wait [#allocation3 + $0xc], 16 }
 0x15f   :  { %1623 = vsyncadd [#allocation3 + $0xc], 4294967280 }
 0x160   :  { %1624 = dma.done.wait [#allocation3 + $0xd], 16 }
 0x161   :  { %1625 = vsyncadd [#allocation3 + $0xd], 4294967280 }
 0x162   :  { %1626 = dma.done.wait [#allocation3 + $0xe], 16 }
 0x163   :  { %1627 = vsyncadd [#allocation3 + $0xe], 4294967280 }
 0x164   :  { %1628 = dma.done.wait [#allocation3 + $0xf], 16 }
 0x165   :  { %1629 = vsyncadd [#allocation3 + $0xf], 4294967280  ;;  %s1649_s1 = smov [#allocation6]   ;;  %v649_v0 = vld [vmem:[#allocation2] sm:$0xff]  ;;  %v650_v1 = vld [vmem:[#allocation2 + $0x8] sm:$0xff] }
 0x166   :  { %s660_s14 = sshll.u32 %s1649_s1, 4  ;;  %v651_v2 = vmul.f32 5.656854, %v649_v0  ;;  %v652_v3 = vmul.f32 5.656854, %v650_v1  ;;  %s661_s14 = int_to_ptr.vmem [resolvable:$true] %s660_s14 }
 0x167   :  { %s1576_s29 = scalar_lea.vmem %s661_s14, 256  ;;  %p1581_p7 = scmp.lt.s32.totalorder %s661_s14, %s661_s14 }
 0x168   :  { %653 = vst [vmem:[#allocation6] sm:$0xff] %v651_v2  ;;  %654 = vst [vmem:[#allocation6 + $0x8] sm:$0xff] %v652_v3  ;;  %p1577_p6 = scmp.ne.s32.totalorder %s661_s14, %s1576_s29  ;;  %p1582_p8 = scmp.lt.s32.totalorder %s1576_s29, %s1576_s29 }
 0x16a   :  { %p1583_p9 = por %p1582_p8, %p1581_p7 }
 0x16c   :  { %p1584_p10 = pnand %p1583_p9, %p1577_p6 }
 0x16e   :  { %1587 = shalt.err (!%p1584_p10)
}
 0x16f   :  { %s1650_s5 = smov 128   ;;  %s1651_s7 = smov 8  }
 0x170   :  { %666 = dma.vmem_to_hbm [thread:$0]  %s661_s14, 256, %s1914_s2, [#allocation7], %s1650_s5, %s1650_s5, %s1651_s7  }
 0x171   :  { %1630 = dma.done.wait [#allocation7], 256  }
 0x172   :  { %1631 = vsyncadd [#allocation7], 4294967040 }
 0x173   :  { %670 = vsyncpa [#allocation7], 1 }
 0x174   :  { %671 = vsyncmov [#allocation3] }
 0x177   :  { %s672_s13 = vpop.sfrf %671 }
 0x178   :  { %p1164_p11 = scmp.ne.s32.totalorder %s672_s13, 0 }
 0x17a   :  { %676 = shalt.err (%p1164_p11)  }
 0x17b   :  { %678 = vsyncmov [#allocation3 + $0x1] }
 0x17e   :  { %s679_s10 = vpop.sfrf %678 }
 0x17f   :  { %p1165_p12 = scmp.ne.s32.totalorder %s679_s10, 0 }
 0x181   :  { %683 = shalt.err (%p1165_p12)  }
 0x182   :  { %685 = vsyncmov [#allocation3 + $0x2] }
 0x185   :  { %s686_s11 = vpop.sfrf %685 }
 0x186   :  { %p1166_p13 = scmp.ne.s32.totalorder %s686_s11, 0 }
 0x188   :  { %690 = shalt.err (%p1166_p13)  }
 0x189   :  { %692 = vsyncmov [#allocation3 + $0x3] }
 0x18c   :  { %s693_s15 = vpop.sfrf %692 }
 0x18d   :  { %p1167_p0 = scmp.ne.s32.totalorder %s693_s15, 0 }
 0x18f   :  { %697 = shalt.err (%p1167_p0)  }
 0x190   :  { %699 = vsyncmov [#allocation3 + $0x4] }
 0x193   :  { %s700_s2 = vpop.sfrf %699 }
 0x194   :  { %p1168_p1 = scmp.ne.s32.totalorder %s700_s2, 0 }
 0x196   :  { %704 = shalt.err (%p1168_p1)  }
 0x197   :  { %706 = vsyncmov [#allocation3 + $0x5] }
 0x19a   :  { %s707_s12 = vpop.sfrf %706 }
 0x19b   :  { %p1169_p2 = scmp.ne.s32.totalorder %s707_s12, 0 }
 0x19d   :  { %711 = shalt.err (%p1169_p2)  }
 0x19e   :  { %713 = vsyncmov [#allocation3 + $0x6] }
 0x1a1   :  { %s714_s16 = vpop.sfrf %713 }
 0x1a2   :  { %p1170_p3 = scmp.ne.s32.totalorder %s714_s16, 0 }
 0x1a4   :  { %718 = shalt.err (%p1170_p3)  }
 0x1a5   :  { %720 = vsyncmov [#allocation3 + $0x7] }
 0x1a8   :  { %s721_s18 = vpop.sfrf %720 }
 0x1a9   :  { %p1171_p4 = scmp.ne.s32.totalorder %s721_s18, 0 }
 0x1ab   :  { %725 = shalt.err (%p1171_p4)  }
 0x1ac   :  { %727 = vsyncmov [#allocation3 + $0x8] }
 0x1af   :  { %s728_s22 = vpop.sfrf %727 }
 0x1b0   :  { %p1172_p5 = scmp.ne.s32.totalorder %s728_s22, 0 }
 0x1b2   :  { %732 = shalt.err (%p1172_p5)  }
 0x1b3   :  { %734 = vsyncmov [#allocation3 + $0x9] }
 0x1b6   :  { %s735_s23 = vpop.sfrf %734 }
 0x1b7   :  { %p1173_p6 = scmp.ne.s32.totalorder %s735_s23, 0 }
 0x1b9   :  { %739 = shalt.err (%p1173_p6)  }
 0x1ba   :  { %741 = vsyncmov [#allocation3 + $0xa] }
 0x1bd   :  { %s742_s19 = vpop.sfrf %741 }
 0x1be   :  { %p1174_p7 = scmp.ne.s32.totalorder %s742_s19, 0 }
 0x1c0   :  { %746 = shalt.err (%p1174_p7)  }
 0x1c1   :  { %748 = vsyncmov [#allocation3 + $0xb] }
 0x1c4   :  { %s749_s21 = vpop.sfrf %748 }
 0x1c5   :  { %p1175_p8 = scmp.ne.s32.totalorder %s749_s21, 0 }
 0x1c7   :  { %753 = shalt.err (%p1175_p8)  }
 0x1c8   :  { %755 = vsyncmov [#allocation3 + $0xc] }
 0x1cb   :  { %s756_s17 = vpop.sfrf %755 }
 0x1cc   :  { %p1176_p9 = scmp.ne.s32.totalorder %s756_s17, 0 }
 0x1ce   :  { %760 = shalt.err (%p1176_p9)  }
 0x1cf   :  { %762 = vsyncmov [#allocation3 + $0xd] }
 0x1d2   :  { %s763_s24 = vpop.sfrf %762 }
 0x1d3   :  { %p1177_p10 = scmp.ne.s32.totalorder %s763_s24, 0 }
 0x1d5   :  { %767 = shalt.err (%p1177_p10)  }
 0x1d6   :  { %769 = vsyncmov [#allocation3 + $0xe] }
 0x1d9   :  { %s770_s25 = vpop.sfrf %769 }
 0x1da   :  { %p1178_p11 = scmp.ne.s32.totalorder %s770_s25, 0 }
 0x1dc   :  { %774 = shalt.err (%p1178_p11)  }
 0x1dd   :  { %776 = vsyncmov [#allocation3 + $0xf] }
 0x1e0   :  { %s777_s20 = vpop.sfrf %776 }
 0x1e1   :  { %p1179_p12 = scmp.ne.s32.totalorder %s777_s20, 0 }
 0x1e3   :  { %781 = shalt.err (%p1179_p12)  }
 0x1e4   :  { %783 = vsyncmov [#allocation3 + $0x10] }
 0x1e7   :  { %s784_s28 = vpop.sfrf %783 }
 0x1e8   :  { %p1180_p13 = scmp.ne.s32.totalorder %s784_s28, 0 }
 0x1ea   :  { %788 = shalt.err (%p1180_p13)  }
 0x1eb   :  { %790 = vsyncmov [#allocation3 + $0x11] }
 0x1ee   :  { %s791_s26 = vpop.sfrf %790 }
 0x1ef   :  { %p1181_p0 = scmp.ne.s32.totalorder %s791_s26, 0 }
 0x1f1   :  { %795 = shalt.err (%p1181_p0)  }
 0x1f2   :  { %797 = vsyncmov [#allocation3 + $0x12] }
 0x1f5   :  { %s798_s27 = vpop.sfrf %797 }
 0x1f6   :  { %p1182_p1 = scmp.ne.s32.totalorder %s798_s27, 0 }
 0x1f8   :  { %802 = shalt.err (%p1182_p1)  }
 0x1f9   :  { %804 = vsyncmov [#allocation3 + $0x13] }
 0x1fc   :  { %s805_s30 = vpop.sfrf %804 }
 0x1fd   :  { %p1183_p2 = scmp.ne.s32.totalorder %s805_s30, 0 }
 0x1ff   :  { %809 = shalt.err (%p1183_p2)  }
 0x200   :  { %811 = vsyncmov [#allocation3 + $0x14] }
 0x203   :  { %s812_s4 = vpop.sfrf %811 }
 0x204   :  { %p1184_p3 = scmp.ne.s32.totalorder %s812_s4, 0 }
 0x206   :  { %816 = shalt.err (%p1184_p3)  }
 0x207   :  { %818 = vsyncmov [#allocation3 + $0x15] }
 0x20a   :  { %s819_s6 = vpop.sfrf %818 }
 0x20b   :  { %p1185_p4 = scmp.ne.s32.totalorder %s819_s6, 0 }
 0x20d   :  { %823 = shalt.err (%p1185_p4)  }
 0x20e   :  { %825 = vsyncmov [#allocation3 + $0x16] }
 0x211   :  { %s826_s3 = vpop.sfrf %825 }
 0x212   :  { %p1186_p5 = scmp.ne.s32.totalorder %s826_s3, 0 }
 0x214   :  { %830 = shalt.err (%p1186_p5)  }
 0x215   :  { %832 = vsyncmov [#allocation3 + $0x17] }
 0x218   :  { %s833_s0 = vpop.sfrf %832 }
 0x219   :  { %p1187_p6 = scmp.ne.s32.totalorder %s833_s0, 0 }
 0x21b   :  { %837 = shalt.err (%p1187_p6)  }
 0x21c   :  { %839 = vsyncmov [#allocation3 + $0x18] }
 0x21f   :  { %s840_s1 = vpop.sfrf %839 }
 0x220   :  { %p1188_p7 = scmp.ne.s32.totalorder %s840_s1, 0 }
 0x222   :  { %844 = shalt.err (%p1188_p7)  }
 0x223   :  { %846 = vsyncmov [#allocation3 + $0x19] }
 0x226   :  { %s847_s14 = vpop.sfrf %846 }
 0x227   :  { %p1189_p8 = scmp.ne.s32.totalorder %s847_s14, 0 }
 0x229   :  { %851 = shalt.err (%p1189_p8)  }
 0x22a   :  { %853 = vsyncmov [#allocation3 + $0x1a] }
 0x22d   :  { %s854_s29 = vpop.sfrf %853 }
 0x22e   :  { %p1190_p9 = scmp.ne.s32.totalorder %s854_s29, 0 }
 0x230   :  { %858 = shalt.err (%p1190_p9)  }
 0x231   :  { %860 = vsyncmov [#allocation3 + $0x1b] }
 0x234   :  { %s861_s5 = vpop.sfrf %860 }
 0x235   :  { %p1191_p10 = scmp.ne.s32.totalorder %s861_s5, 0 }
 0x237   :  { %865 = shalt.err (%p1191_p10)  }
 0x238   :  { %867 = vsyncmov [#allocation3 + $0x1c] }
 0x23b   :  { %s868_s7 = vpop.sfrf %867 }
 0x23c   :  { %p1192_p11 = scmp.ne.s32.totalorder %s868_s7, 0 }
 0x23e   :  { %872 = shalt.err (%p1192_p11)  }
 0x23f   :  { %874 = vsyncmov [#allocation3 + $0x1d] }
 0x242   :  { %s875_s8 = vpop.sfrf %874 }
 0x243   :  { %p1193_p12 = scmp.ne.s32.totalorder %s875_s8, 0 }
 0x245   :  { %879 = shalt.err (%p1193_p12)  }
 0x246   :  { %881 = vsyncmov [#allocation3 + $0x1e] }
 0x249   :  { %s882_s9 = vpop.sfrf %881 }
 0x24a   :  { %p1194_p13 = scmp.ne.s32.totalorder %s882_s9, 0 }
 0x24c   :  { %886 = shalt.err (%p1194_p13)  }
 0x24d   :  { %888 = vsyncmov [#allocation3 + $0x1f] }
 0x250   :  { %s889_s13 = vpop.sfrf %888 }
 0x251   :  { %p1195_p0 = scmp.ne.s32.totalorder %s889_s13, 0 }
 0x253   :  { %893 = shalt.err (%p1195_p0)  }

</bundles_post_ra>
